<compile_context>
chip_gen: v5e
topology: v5e:2x2
jax: 0.10.0
libtpu: 0.0.40
codegen_flags: <defaults>
</compile_context>

<pallas_src>
import functools

import jax
import jax.numpy as jnp
import numpy as np
from jax.experimental import pallas as pl
from jax.experimental.pallas import tpu as pltpu

CONV_SIZE = 100          # PyTorch channel count
C_PAD = 128              # kernel-internal (lane-dense) channel width
BN_EPS = 1e-5
LEAKY_SLOPE = 0.2


# ---------------- fused Pallas kernel ----------------

def fused_kernel(x_ref, w1_ref, b1_ref, w2_ref, b2_ref,
                 gamma_ref, beta_ref, wc2_ref, bc2_ref, out_ref, *, samples):
    # ---- Stage 1: Linear -> Sigmoid (EUP tanh) -> [Linear with ConvT(1x1) folded in] ----
    h = jnp.dot(x_ref[...], w1_ref[...], preferred_element_type=jnp.float32) + b1_ref[...]
    h = 0.5 * jnp.tanh(0.5 * h) + 0.5            # sigmoid via EUP tanh (no VALU divide)
    # z[b, s*C_PAD + c] = ConvT(1x1) output channel c at (batch b, sample s); padded
    # channels (c >= CONV_SIZE) are exactly zero because W2'/b2' padding is zero.
    z = jnp.dot(h, w2_ref[...], preferred_element_type=jnp.float32) + b2_ref[...]   # (B, S*C_PAD)

    # ---- BatchNorm2d (training-mode, biased stats over all (b, s) positions, per channel) ----
    # Two cheap sweeps over the S static lane-tile slices of z (all VALU, 2 sublane
    # reductions total); matches the reference two-pass mean/var numerics.
    inv_n = 1.0 / (z.shape[0] * samples)
    acc = z[:, 0:C_PAD]
    for s in range(1, samples):
        acc = acc + z[:, s * C_PAD:(s + 1) * C_PAD]
    mean = jnp.sum(acc, axis=0, keepdims=True) * inv_n                 # (1, C_PAD)

    d0 = z[:, 0:C_PAD] - mean
    accv = d0 * d0
    for s in range(1, samples):
        d = z[:, s * C_PAD:(s + 1) * C_PAD] - mean
        accv = accv + d * d
    var = jnp.sum(accv, axis=0, keepdims=True) * inv_n                 # (1, C_PAD)

    scale = gamma_ref[...] * jax.lax.rsqrt(var + BN_EPS)               # gamma / sqrt(var+eps)
    shift = beta_ref[...] - mean * scale

    # ---- Per-sample block: BN affine -> LeakyReLU -> ConvT(C->1,(1,F)) matmul -> store ----
    f_pad = out_ref.shape[1] // samples
    for s in range(samples):
        zn = z[:, s * C_PAD:(s + 1) * C_PAD] * scale + shift
        a = jnp.where(zn >= 0, zn, LEAKY_SLOPE * zn)
        out_ref[:, s * f_pad:(s + 1) * f_pad] = (
            jnp.dot(a, wc2_ref[...], preferred_element_type=jnp.float32) + bc2_ref[...])


# ---------------- wrapper ----------------

@functools.partial(jax.jit, static_argnames=("samples", "features"))
def autoencoder_out_forward(x, packed, *, samples, features):
    (w1, b1, w2, b2, gamma, beta, wc2, bc2) = packed
    batch = x.shape[0]
    f_pad = wc2.shape[1]

    vmem = pl.BlockSpec(memory_space=pltpu.MemorySpace.VMEM)

    out = pl.pallas_call(
        functools.partial(fused_kernel, samples=samples),
        out_shape=jax.ShapeDtypeStruct((batch, samples * f_pad), jnp.float32),
        in_specs=[vmem] * 9,
        out_specs=vmem,
    )(x, w1, b1, w2, b2, gamma, beta, wc2, bc2)

    # (B, S*F_PAD) -> (B, S, F); drop lane padding.  == torch (B,1,S,F).squeeze() for B,S,F > 1.
    out = out.reshape(batch, samples, f_pad)[:, :, :features]
    # TODO(synk): torch .squeeze() would also drop a size-1 batch (or features=1) dim;
    # not replicated here.
    return out


# ---------------- deterministic PyTorch-layout params (synthetic) ----------------

def init_torch_params(key, latent_size, samples, features):
    out_linear = samples * CONV_SIZE
    hidden1 = int(out_linear - 3 * (out_linear - latent_size) / 4)
    ks = jax.random.split(key, 8)

    def u(k, shape, fan_in):
        bound = 1.0 / np.sqrt(fan_in)
        return jax.random.uniform(k, shape, jnp.float32, -bound, bound)

    return {
        "w1": u(ks[0], (hidden1, latent_size), latent_size),          # Linear(latent->h1)
        "b1": u(ks[1], (hidden1,), latent_size),
        "w2": u(ks[2], (out_linear, hidden1), hidden1),               # Linear(h1->S*C)
        "b2": u(ks[3], (out_linear,), hidden1),
        "wc1": u(ks[4], (CONV_SIZE, CONV_SIZE, 1, 1), CONV_SIZE),     # ConvT(C->C,(1,1))
        "bc1": u(ks[5], (CONV_SIZE,), CONV_SIZE),
        "gamma": jnp.ones((CONV_SIZE,), jnp.float32),                 # BatchNorm2d defaults
        "beta": jnp.zeros((CONV_SIZE,), jnp.float32),
        "wc2": u(ks[6], (CONV_SIZE, 1, 1, features), CONV_SIZE * features),  # ConvT(C->1,(1,F))
        "bc2": u(ks[7], (1,), CONV_SIZE * features),
    }


def pack_params(tp, samples, features):
    """Repack PyTorch-shaped params into the lane-dense (padded) kernel layout.

    The ConvT(1x1) channel matmul is folded into the second Linear here
    (exact reassociation):  W2'_s = W2_s @ Wc1,  b2'_s = b2_s @ Wc1 + bc1.
    All padding (hidden 224->256, channels 100->128, features F->F_PAD) is zero,
    which BN/LeakyReLU/final matmul preserve exactly.
    """
    hidden1 = tp["w1"].shape[0]
    latent = tp["w1"].shape[1]
    h_pad = ((hidden1 + 127) // 128) * 128               # 224 -> 256
    f_pad = ((features + 127) // 128) * 128

    # Linear 1: (latent, h_pad); padded hidden units get zero weight/bias (their
    # sigmoid output of 0.5 is annihilated by the zero W2' rows below).
    w1 = jnp.zeros((latent, h_pad), jnp.float32).at[:, :hidden1].set(tp["w1"].T)
    b1 = jnp.zeros((1, h_pad), jnp.float32).at[0, :hidden1].set(tp["b1"])

    # torch flat output unit k = c*samples + s (from the NCHW reshape);
    # kernel column order = s*C_PAD + c (lane-dense 128-wide block per sample).
    wc1 = tp["wc1"].reshape(CONV_SIZE, CONV_SIZE)                      # (c_in, c_out)
    w2_sc = jnp.transpose(tp["w2"].reshape(CONV_SIZE, samples, hidden1), (1, 0, 2))  # (s, c_in, h)
    w2_fold = jnp.einsum("sch,cd->shd", w2_sc, wc1)                    # (s, h, c_out)
    b2_sc = tp["b2"].reshape(CONV_SIZE, samples).T                     # (s, c_in)
    b2_fold = jnp.einsum("sc,cd->sd", b2_sc, wc1) + tp["bc1"][None, :]  # (s, c_out)

    w2 = (jnp.zeros((samples, h_pad, C_PAD), jnp.float32)
          .at[:, :hidden1, :CONV_SIZE].set(w2_fold))
    w2 = jnp.transpose(w2, (1, 0, 2)).reshape(h_pad, samples * C_PAD)  # (h_pad, S*C_PAD)
    b2 = (jnp.zeros((samples, C_PAD), jnp.float32).at[:, :CONV_SIZE].set(b2_fold)
          .reshape(1, samples * C_PAD))

    gamma = jnp.zeros((1, C_PAD), jnp.float32).at[0, :CONV_SIZE].set(tp["gamma"])
    beta = jnp.zeros((1, C_PAD), jnp.float32).at[0, :CONV_SIZE].set(tp["beta"])

    wc2 = (jnp.zeros((C_PAD, f_pad), jnp.float32)
           .at[:CONV_SIZE, :features].set(tp["wc2"].reshape(CONV_SIZE, features)))
    bc2 = jnp.zeros((1, f_pad), jnp.float32).at[0, :features].set(tp["bc2"][0])

    return (w1, b1, w2, b2, gamma, beta, wc2, bc2)


# ---------------- pure-JAX reference emulating the PyTorch forward ----------------

def reference_forward(x, tp, samples, features):
    h = jax.nn.sigmoid(x @ tp["w1"].T + tp["b1"])
    y = h @ tp["w2"].T + tp["b2"]                        # (B, S*C), unit order c*S + s
    b = x.shape[0]
    y = y.reshape(b, CONV_SIZE, samples)                 # (B, C, S)  (width-1 axis dropped)
    w1c = tp["wc1"].reshape(CONV_SIZE, CONV_SIZE)        # (c_in, c_out)
    z = jnp.einsum("bcs,cd->bds", y, w1c) + tp["bc1"][None, :, None]
    mean = z.mean(axis=(0, 2), keepdims=True)            # training-mode BN (biased stats)
    var = jnp.mean((z - mean) ** 2, axis=(0, 2), keepdims=True)
    zn = ((z - mean) / jnp.sqrt(var + BN_EPS)
          * tp["gamma"][None, :, None] + tp["beta"][None, :, None])
    a = jnp.where(zn >= 0, zn, LEAKY_SLOPE * zn)
    w2c = tp["wc2"].reshape(CONV_SIZE, features)         # (c_in, f)
    out = jnp.einsum("bds,df->bsf", a, w2c) + tp["bc2"][0]
    return out                                           # (B, S, F)


if __name__ == "__main__":
    latent_size, samples, features, batch = 32, 8, 16, 2

    key = jax.random.PRNGKey(0)
    kp, kx = jax.random.split(key)
    torch_params = init_torch_params(kp, latent_size, samples, features)
    packed = pack_params(torch_params, samples, features)
    x = jax.random.normal(kx, (batch, latent_size), jnp.float32)

    out = autoencoder_out_forward(x, packed, samples=samples, features=features)
    out = jax.block_until_ready(out)

    ref = reference_forward(x, torch_params, samples, features)
    np.testing.assert_allclose(np.asarray(out), np.asarray(ref), rtol=1e-4, atol=1e-4)

    print("KERNEL_OK")
</pallas_src>

<mosaic_0001>
module attributes {stable_mosaic.version = 11 : i64} {
  func.func @fused_kernel(%arg0: memref<2x32xf32, #tpu.memory_space<vmem>>, %arg1: memref<32x256xf32, #tpu.memory_space<vmem>>, %arg2: memref<1x256xf32, #tpu.memory_space<vmem>>, %arg3: memref<256x1024xf32, #tpu.memory_space<vmem>>, %arg4: memref<1x1024xf32, #tpu.memory_space<vmem>>, %arg5: memref<1x128xf32, #tpu.memory_space<vmem>>, %arg6: memref<1x128xf32, #tpu.memory_space<vmem>>, %arg7: memref<128x128xf32, #tpu.memory_space<vmem>>, %arg8: memref<1x128xf32, #tpu.memory_space<vmem>>, %arg9: memref<2x1024xf32, #tpu.memory_space<vmem>>) attributes {dimension_semantics = [], scalar_prefetch = 0 : i64, scratch_operands = 0 : i64, tpu.core_type = #tpu.core_type<tc>} {
    %c0 = arith.constant 0 : index
    %c0_0 = arith.constant 0 : index
    %0 = vector.load %arg0[%c0, %c0_0] : memref<2x32xf32, #tpu.memory_space<vmem>>, vector<2x32xf32>
    %c0_1 = arith.constant 0 : index
    %c0_2 = arith.constant 0 : index
    %1 = vector.load %arg1[%c0_1, %c0_2] : memref<32x256xf32, #tpu.memory_space<vmem>>, vector<32x256xf32>
    %cst = arith.constant dense<0.000000e+00> : vector<2x256xf32>
    %2 = tpu.matmul %0, %1, %cst {dimension_numbers = #tpu.dot_dimension_numbers<[1], [0], [0], [1], [0, 0, 1, 1], [], []>} : vector<2x32xf32>, vector<32x256xf32>, vector<2x256xf32> -> vector<2x256xf32>
    %c0_3 = arith.constant 0 : index
    %c0_4 = arith.constant 0 : index
    %3 = vector.load %arg2[%c0_3, %c0_4] : memref<1x256xf32, #tpu.memory_space<vmem>>, vector<1x256xf32>
    %4 = vector.broadcast %3 : vector<1x256xf32> to vector<2x256xf32>
    %5 = arith.addf %2, %4 : vector<2x256xf32>
    %cst_5 = arith.constant 5.000000e-01 : f32
    %6 = vector.broadcast %cst_5 : f32 to vector<2x256xf32>
    %7 = arith.mulf %6, %5 : vector<2x256xf32>
    %8 = math.tanh %7 : vector<2x256xf32>
    %cst_6 = arith.constant 5.000000e-01 : f32
    %9 = vector.broadcast %cst_6 : f32 to vector<2x256xf32>
    %10 = arith.mulf %9, %8 : vector<2x256xf32>
    %cst_7 = arith.constant 5.000000e-01 : f32
    %11 = vector.broadcast %cst_7 : f32 to vector<2x256xf32>
    %12 = arith.addf %10, %11 : vector<2x256xf32>
    %c0_8 = arith.constant 0 : index
    %c0_9 = arith.constant 0 : index
    %13 = vector.load %arg3[%c0_8, %c0_9] : memref<256x1024xf32, #tpu.memory_space<vmem>>, vector<256x1024xf32>
    %cst_10 = arith.constant dense<0.000000e+00> : vector<2x1024xf32>
    %14 = tpu.matmul %12, %13, %cst_10 {dimension_numbers = #tpu.dot_dimension_numbers<[1], [0], [0], [1], [0, 0, 1, 1], [], []>} : vector<2x256xf32>, vector<256x1024xf32>, vector<2x1024xf32> -> vector<2x1024xf32>
    %c0_11 = arith.constant 0 : index
    %c0_12 = arith.constant 0 : index
    %15 = vector.load %arg4[%c0_11, %c0_12] : memref<1x1024xf32, #tpu.memory_space<vmem>>, vector<1x1024xf32>
    %16 = vector.broadcast %15 : vector<1x1024xf32> to vector<2x1024xf32>
    %17 = arith.addf %14, %16 : vector<2x1024xf32>
    %18 = vector.extract_strided_slice %17 {offsets = [0, 0], sizes = [2, 128], strides = [1, 1]} : vector<2x1024xf32> to vector<2x128xf32>
    %19 = vector.extract_strided_slice %17 {offsets = [0, 128], sizes = [2, 128], strides = [1, 1]} : vector<2x1024xf32> to vector<2x128xf32>
    %20 = arith.addf %18, %19 : vector<2x128xf32>
    %21 = vector.extract_strided_slice %17 {offsets = [0, 256], sizes = [2, 128], strides = [1, 1]} : vector<2x1024xf32> to vector<2x128xf32>
    %22 = arith.addf %20, %21 : vector<2x128xf32>
    %23 = vector.extract_strided_slice %17 {offsets = [0, 384], sizes = [2, 128], strides = [1, 1]} : vector<2x1024xf32> to vector<2x128xf32>
    %24 = arith.addf %22, %23 : vector<2x128xf32>
    %25 = vector.extract_strided_slice %17 {offsets = [0, 512], sizes = [2, 128], strides = [1, 1]} : vector<2x1024xf32> to vector<2x128xf32>
    %26 = arith.addf %24, %25 : vector<2x128xf32>
    %27 = vector.extract_strided_slice %17 {offsets = [0, 640], sizes = [2, 128], strides = [1, 1]} : vector<2x1024xf32> to vector<2x128xf32>
    %28 = arith.addf %26, %27 : vector<2x128xf32>
    %29 = vector.extract_strided_slice %17 {offsets = [0, 768], sizes = [2, 128], strides = [1, 1]} : vector<2x1024xf32> to vector<2x128xf32>
    %30 = arith.addf %28, %29 : vector<2x128xf32>
    %31 = vector.extract_strided_slice %17 {offsets = [0, 896], sizes = [2, 128], strides = [1, 1]} : vector<2x1024xf32> to vector<2x128xf32>
    %32 = arith.addf %30, %31 : vector<2x128xf32>
    %cst_13 = arith.constant dense<0.000000e+00> : vector<128xf32>
    %33 = vector.multi_reduction <add>, %32, %cst_13 [0] : vector<2x128xf32> to vector<128xf32>
    %34 = vector.shape_cast %33 : vector<128xf32> to vector<1x128xf32>
    %cst_14 = arith.constant 6.250000e-02 : f32
    %35 = vector.broadcast %cst_14 : f32 to vector<1x128xf32>
    %36 = arith.mulf %34, %35 : vector<1x128xf32>
    %37 = vector.extract_strided_slice %17 {offsets = [0, 0], sizes = [2, 128], strides = [1, 1]} : vector<2x1024xf32> to vector<2x128xf32>
    %38 = vector.broadcast %36 : vector<1x128xf32> to vector<2x128xf32>
    %39 = arith.subf %37, %38 : vector<2x128xf32>
    %40 = arith.mulf %39, %39 : vector<2x128xf32>
    %41 = vector.extract_strided_slice %17 {offsets = [0, 128], sizes = [2, 128], strides = [1, 1]} : vector<2x1024xf32> to vector<2x128xf32>
    %42 = vector.broadcast %36 : vector<1x128xf32> to vector<2x128xf32>
    %43 = arith.subf %41, %42 : vector<2x128xf32>
    %44 = arith.mulf %43, %43 : vector<2x128xf32>
    %45 = arith.addf %40, %44 : vector<2x128xf32>
    %46 = vector.extract_strided_slice %17 {offsets = [0, 256], sizes = [2, 128], strides = [1, 1]} : vector<2x1024xf32> to vector<2x128xf32>
    %47 = vector.broadcast %36 : vector<1x128xf32> to vector<2x128xf32>
    %48 = arith.subf %46, %47 : vector<2x128xf32>
    %49 = arith.mulf %48, %48 : vector<2x128xf32>
    %50 = arith.addf %45, %49 : vector<2x128xf32>
    %51 = vector.extract_strided_slice %17 {offsets = [0, 384], sizes = [2, 128], strides = [1, 1]} : vector<2x1024xf32> to vector<2x128xf32>
    %52 = vector.broadcast %36 : vector<1x128xf32> to vector<2x128xf32>
    %53 = arith.subf %51, %52 : vector<2x128xf32>
    %54 = arith.mulf %53, %53 : vector<2x128xf32>
    %55 = arith.addf %50, %54 : vector<2x128xf32>
    %56 = vector.extract_strided_slice %17 {offsets = [0, 512], sizes = [2, 128], strides = [1, 1]} : vector<2x1024xf32> to vector<2x128xf32>
    %57 = vector.broadcast %36 : vector<1x128xf32> to vector<2x128xf32>
    %58 = arith.subf %56, %57 : vector<2x128xf32>
    %59 = arith.mulf %58, %58 : vector<2x128xf32>
    %60 = arith.addf %55, %59 : vector<2x128xf32>
    %61 = vector.extract_strided_slice %17 {offsets = [0, 640], sizes = [2, 128], strides = [1, 1]} : vector<2x1024xf32> to vector<2x128xf32>
    %62 = vector.broadcast %36 : vector<1x128xf32> to vector<2x128xf32>
    %63 = arith.subf %61, %62 : vector<2x128xf32>
    %64 = arith.mulf %63, %63 : vector<2x128xf32>
    %65 = arith.addf %60, %64 : vector<2x128xf32>
    %66 = vector.extract_strided_slice %17 {offsets = [0, 768], sizes = [2, 128], strides = [1, 1]} : vector<2x1024xf32> to vector<2x128xf32>
    %67 = vector.broadcast %36 : vector<1x128xf32> to vector<2x128xf32>
    %68 = arith.subf %66, %67 : vector<2x128xf32>
    %69 = arith.mulf %68, %68 : vector<2x128xf32>
    %70 = arith.addf %65, %69 : vector<2x128xf32>
    %71 = vector.extract_strided_slice %17 {offsets = [0, 896], sizes = [2, 128], strides = [1, 1]} : vector<2x1024xf32> to vector<2x128xf32>
    %72 = vector.broadcast %36 : vector<1x128xf32> to vector<2x128xf32>
    %73 = arith.subf %71, %72 : vector<2x128xf32>
    %74 = arith.mulf %73, %73 : vector<2x128xf32>
    %75 = arith.addf %70, %74 : vector<2x128xf32>
    %cst_15 = arith.constant dense<0.000000e+00> : vector<128xf32>
    %76 = vector.multi_reduction <add>, %75, %cst_15 [0] : vector<2x128xf32> to vector<128xf32>
    %77 = vector.shape_cast %76 : vector<128xf32> to vector<1x128xf32>
    %cst_16 = arith.constant 6.250000e-02 : f32
    %78 = vector.broadcast %cst_16 : f32 to vector<1x128xf32>
    %79 = arith.mulf %77, %78 : vector<1x128xf32>
    %c0_17 = arith.constant 0 : index
    %c0_18 = arith.constant 0 : index
    %80 = vector.load %arg5[%c0_17, %c0_18] : memref<1x128xf32, #tpu.memory_space<vmem>>, vector<1x128xf32>
    %cst_19 = arith.constant 9.99999974E-6 : f32
    %81 = vector.broadcast %cst_19 : f32 to vector<1x128xf32>
    %82 = arith.addf %79, %81 : vector<1x128xf32>
    %83 = math.rsqrt %82 : vector<1x128xf32>
    %84 = arith.mulf %80, %83 : vector<1x128xf32>
    %c0_20 = arith.constant 0 : index
    %c0_21 = arith.constant 0 : index
    %85 = vector.load %arg6[%c0_20, %c0_21] : memref<1x128xf32, #tpu.memory_space<vmem>>, vector<1x128xf32>
    %86 = arith.mulf %36, %84 : vector<1x128xf32>
    %87 = arith.subf %85, %86 : vector<1x128xf32>
    %88 = vector.extract_strided_slice %17 {offsets = [0, 0], sizes = [2, 128], strides = [1, 1]} : vector<2x1024xf32> to vector<2x128xf32>
    %89 = vector.broadcast %84 : vector<1x128xf32> to vector<2x128xf32>
    %90 = arith.mulf %88, %89 : vector<2x128xf32>
    %91 = vector.broadcast %87 : vector<1x128xf32> to vector<2x128xf32>
    %92 = arith.addf %90, %91 : vector<2x128xf32>
    %cst_22 = arith.constant 0.000000e+00 : f32
    %93 = vector.broadcast %cst_22 : f32 to vector<2x128xf32>
    %94 = arith.cmpf oge, %92, %93 : vector<2x128xf32>
    %cst_23 = arith.constant 2.000000e-01 : f32
    %95 = vector.broadcast %cst_23 : f32 to vector<2x128xf32>
    %96 = arith.mulf %95, %92 : vector<2x128xf32>
    %97 = arith.select %94, %92, %96 : vector<2x128xi1>, vector<2x128xf32>
    %c0_24 = arith.constant 0 : index
    %c0_25 = arith.constant 0 : index
    %98 = vector.load %arg7[%c0_24, %c0_25] : memref<128x128xf32, #tpu.memory_space<vmem>>, vector<128x128xf32>
    %cst_26 = arith.constant dense<0.000000e+00> : vector<2x128xf32>
    %99 = tpu.matmul %97, %98, %cst_26 {dimension_numbers = #tpu.dot_dimension_numbers<[1], [0], [0], [1], [0, 0, 1, 1], [], []>} : vector<2x128xf32>, vector<128x128xf32>, vector<2x128xf32> -> vector<2x128xf32>
    %c0_27 = arith.constant 0 : index
    %c0_28 = arith.constant 0 : index
    %100 = vector.load %arg8[%c0_27, %c0_28] : memref<1x128xf32, #tpu.memory_space<vmem>>, vector<1x128xf32>
    %101 = vector.broadcast %100 : vector<1x128xf32> to vector<2x128xf32>
    %102 = arith.addf %99, %101 : vector<2x128xf32>
    %c0_29 = arith.constant 0 : index
    %c0_30 = arith.constant 0 : index
    %103 = vector.load %arg9[%c0_29, %c0_30] : memref<2x1024xf32, #tpu.memory_space<vmem>>, vector<2x128xf32>
    tpu.vector_store %arg9[%c0_29, %c0_30], %102 {strides = array<i32>} : memref<2x1024xf32, #tpu.memory_space<vmem>>, vector<2x128xf32>,
    %104 = vector.extract_strided_slice %17 {offsets = [0, 128], sizes = [2, 128], strides = [1, 1]} : vector<2x1024xf32> to vector<2x128xf32>
    %105 = vector.broadcast %84 : vector<1x128xf32> to vector<2x128xf32>
    %106 = arith.mulf %104, %105 : vector<2x128xf32>
    %107 = vector.broadcast %87 : vector<1x128xf32> to vector<2x128xf32>
    %108 = arith.addf %106, %107 : vector<2x128xf32>
    %cst_31 = arith.constant 0.000000e+00 : f32
    %109 = vector.broadcast %cst_31 : f32 to vector<2x128xf32>
    %110 = arith.cmpf oge, %108, %109 : vector<2x128xf32>
    %cst_32 = arith.constant 2.000000e-01 : f32
    %111 = vector.broadcast %cst_32 : f32 to vector<2x128xf32>
    %112 = arith.mulf %111, %108 : vector<2x128xf32>
    %113 = arith.select %110, %108, %112 : vector<2x128xi1>, vector<2x128xf32>
    %c0_33 = arith.constant 0 : index
    %c0_34 = arith.constant 0 : index
    %114 = vector.load %arg7[%c0_33, %c0_34] : memref<128x128xf32, #tpu.memory_space<vmem>>, vector<128x128xf32>
    %cst_35 = arith.constant dense<0.000000e+00> : vector<2x128xf32>
    %115 = tpu.matmul %113, %114, %cst_35 {dimension_numbers = #tpu.dot_dimension_numbers<[1], [0], [0], [1], [0, 0, 1, 1], [], []>} : vector<2x128xf32>, vector<128x128xf32>, vector<2x128xf32> -> vector<2x128xf32>
    %c0_36 = arith.constant 0 : index
    %c0_37 = arith.constant 0 : index
    %116 = vector.load %arg8[%c0_36, %c0_37] : memref<1x128xf32, #tpu.memory_space<vmem>>, vector<1x128xf32>
    %117 = vector.broadcast %116 : vector<1x128xf32> to vector<2x128xf32>
    %118 = arith.addf %115, %117 : vector<2x128xf32>
    %c0_38 = arith.constant 0 : index
    %c128 = arith.constant 128 : index
    %119 = vector.load %arg9[%c0_38, %c128] : memref<2x1024xf32, #tpu.memory_space<vmem>>, vector<2x128xf32>
    tpu.vector_store %arg9[%c0_38, %c128], %118 {strides = array<i32>} : memref<2x1024xf32, #tpu.memory_space<vmem>>, vector<2x128xf32>,
    %120 = vector.extract_strided_slice %17 {offsets = [0, 256], sizes = [2, 128], strides = [1, 1]} : vector<2x1024xf32> to vector<2x128xf32>
    %121 = vector.broadcast %84 : vector<1x128xf32> to vector<2x128xf32>
    %122 = arith.mulf %120, %121 : vector<2x128xf32>
    %123 = vector.broadcast %87 : vector<1x128xf32> to vector<2x128xf32>
    %124 = arith.addf %122, %123 : vector<2x128xf32>
    %cst_39 = arith.constant 0.000000e+00 : f32
    %125 = vector.broadcast %cst_39 : f32 to vector<2x128xf32>
    %126 = arith.cmpf oge, %124, %125 : vector<2x128xf32>
    %cst_40 = arith.constant 2.000000e-01 : f32
    %127 = vector.broadcast %cst_40 : f32 to vector<2x128xf32>
    %128 = arith.mulf %127, %124 : vector<2x128xf32>
    %129 = arith.select %126, %124, %128 : vector<2x128xi1>, vector<2x128xf32>
    %c0_41 = arith.constant 0 : index
    %c0_42 = arith.constant 0 : index
    %130 = vector.load %arg7[%c0_41, %c0_42] : memref<128x128xf32, #tpu.memory_space<vmem>>, vector<128x128xf32>
    %cst_43 = arith.constant dense<0.000000e+00> : vector<2x128xf32>
    %131 = tpu.matmul %129, %130, %cst_43 {dimension_numbers = #tpu.dot_dimension_numbers<[1], [0], [0], [1], [0, 0, 1, 1], [], []>} : vector<2x128xf32>, vector<128x128xf32>, vector<2x128xf32> -> vector<2x128xf32>
    %c0_44 = arith.constant 0 : index
    %c0_45 = arith.constant 0 : index
    %132 = vector.load %arg8[%c0_44, %c0_45] : memref<1x128xf32, #tpu.memory_space<vmem>>, vector<1x128xf32>
    %133 = vector.broadcast %132 : vector<1x128xf32> to vector<2x128xf32>
    %134 = arith.addf %131, %133 : vector<2x128xf32>
    %c0_46 = arith.constant 0 : index
    %c256 = arith.constant 256 : index
    %135 = vector.load %arg9[%c0_46, %c256] : memref<2x1024xf32, #tpu.memory_space<vmem>>, vector<2x128xf32>
    tpu.vector_store %arg9[%c0_46, %c256], %134 {strides = array<i32>} : memref<2x1024xf32, #tpu.memory_space<vmem>>, vector<2x128xf32>,
    %136 = vector.extract_strided_slice %17 {offsets = [0, 384], sizes = [2, 128], strides = [1, 1]} : vector<2x1024xf32> to vector<2x128xf32>
    %137 = vector.broadcast %84 : vector<1x128xf32> to vector<2x128xf32>
    %138 = arith.mulf %136, %137 : vector<2x128xf32>
    %139 = vector.broadcast %87 : vector<1x128xf32> to vector<2x128xf32>
    %140 = arith.addf %138, %139 : vector<2x128xf32>
    %cst_47 = arith.constant 0.000000e+00 : f32
    %141 = vector.broadcast %cst_47 : f32 to vector<2x128xf32>
    %142 = arith.cmpf oge, %140, %141 : vector<2x128xf32>
    %cst_48 = arith.constant 2.000000e-01 : f32
    %143 = vector.broadcast %cst_48 : f32 to vector<2x128xf32>
    %144 = arith.mulf %143, %140 : vector<2x128xf32>
    %145 = arith.select %142, %140, %144 : vector<2x128xi1>, vector<2x128xf32>
    %c0_49 = arith.constant 0 : index
    %c0_50 = arith.constant 0 : index
    %146 = vector.load %arg7[%c0_49, %c0_50] : memref<128x128xf32, #tpu.memory_space<vmem>>, vector<128x128xf32>
    %cst_51 = arith.constant dense<0.000000e+00> : vector<2x128xf32>
    %147 = tpu.matmul %145, %146, %cst_51 {dimension_numbers = #tpu.dot_dimension_numbers<[1], [0], [0], [1], [0, 0, 1, 1], [], []>} : vector<2x128xf32>, vector<128x128xf32>, vector<2x128xf32> -> vector<2x128xf32>
    %c0_52 = arith.constant 0 : index
    %c0_53 = arith.constant 0 : index
    %148 = vector.load %arg8[%c0_52, %c0_53] : memref<1x128xf32, #tpu.memory_space<vmem>>, vector<1x128xf32>
    %149 = vector.broadcast %148 : vector<1x128xf32> to vector<2x128xf32>
    %150 = arith.addf %147, %149 : vector<2x128xf32>
    %c0_54 = arith.constant 0 : index
    %c384 = arith.constant 384 : index
    %151 = vector.load %arg9[%c0_54, %c384] : memref<2x1024xf32, #tpu.memory_space<vmem>>, vector<2x128xf32>
    tpu.vector_store %arg9[%c0_54, %c384], %150 {strides = array<i32>} : memref<2x1024xf32, #tpu.memory_space<vmem>>, vector<2x128xf32>,
    %152 = vector.extract_strided_slice %17 {offsets = [0, 512], sizes = [2, 128], strides = [1, 1]} : vector<2x1024xf32> to vector<2x128xf32>
    %153 = vector.broadcast %84 : vector<1x128xf32> to vector<2x128xf32>
    %154 = arith.mulf %152, %153 : vector<2x128xf32>
    %155 = vector.broadcast %87 : vector<1x128xf32> to vector<2x128xf32>
    %156 = arith.addf %154, %155 : vector<2x128xf32>
    %cst_55 = arith.constant 0.000000e+00 : f32
    %157 = vector.broadcast %cst_55 : f32 to vector<2x128xf32>
    %158 = arith.cmpf oge, %156, %157 : vector<2x128xf32>
    %cst_56 = arith.constant 2.000000e-01 : f32
    %159 = vector.broadcast %cst_56 : f32 to vector<2x128xf32>
    %160 = arith.mulf %159, %156 : vector<2x128xf32>
    %161 = arith.select %158, %156, %160 : vector<2x128xi1>, vector<2x128xf32>
    %c0_57 = arith.constant 0 : index
    %c0_58 = arith.constant 0 : index
    %162 = vector.load %arg7[%c0_57, %c0_58] : memref<128x128xf32, #tpu.memory_space<vmem>>, vector<128x128xf32>
    %cst_59 = arith.constant dense<0.000000e+00> : vector<2x128xf32>
    %163 = tpu.matmul %161, %162, %cst_59 {dimension_numbers = #tpu.dot_dimension_numbers<[1], [0], [0], [1], [0, 0, 1, 1], [], []>} : vector<2x128xf32>, vector<128x128xf32>, vector<2x128xf32> -> vector<2x128xf32>
    %c0_60 = arith.constant 0 : index
    %c0_61 = arith.constant 0 : index
    %164 = vector.load %arg8[%c0_60, %c0_61] : memref<1x128xf32, #tpu.memory_space<vmem>>, vector<1x128xf32>
    %165 = vector.broadcast %164 : vector<1x128xf32> to vector<2x128xf32>
    %166 = arith.addf %163, %165 : vector<2x128xf32>
    %c0_62 = arith.constant 0 : index
    %c512 = arith.constant 512 : index
    %167 = vector.load %arg9[%c0_62, %c512] : memref<2x1024xf32, #tpu.memory_space<vmem>>, vector<2x128xf32>
    tpu.vector_store %arg9[%c0_62, %c512], %166 {strides = array<i32>} : memref<2x1024xf32, #tpu.memory_space<vmem>>, vector<2x128xf32>,
    %168 = vector.extract_strided_slice %17 {offsets = [0, 640], sizes = [2, 128], strides = [1, 1]} : vector<2x1024xf32> to vector<2x128xf32>
    %169 = vector.broadcast %84 : vector<1x128xf32> to vector<2x128xf32>
    %170 = arith.mulf %168, %169 : vector<2x128xf32>
    %171 = vector.broadcast %87 : vector<1x128xf32> to vector<2x128xf32>
    %172 = arith.addf %170, %171 : vector<2x128xf32>
    %cst_63 = arith.constant 0.000000e+00 : f32
    %173 = vector.broadcast %cst_63 : f32 to vector<2x128xf32>
    %174 = arith.cmpf oge, %172, %173 : vector<2x128xf32>
    %cst_64 = arith.constant 2.000000e-01 : f32
    %175 = vector.broadcast %cst_64 : f32 to vector<2x128xf32>
    %176 = arith.mulf %175, %172 : vector<2x128xf32>
    %177 = arith.select %174, %172, %176 : vector<2x128xi1>, vector<2x128xf32>
    %c0_65 = arith.constant 0 : index
    %c0_66 = arith.constant 0 : index
    %178 = vector.load %arg7[%c0_65, %c0_66] : memref<128x128xf32, #tpu.memory_space<vmem>>, vector<128x128xf32>
    %cst_67 = arith.constant dense<0.000000e+00> : vector<2x128xf32>
    %179 = tpu.matmul %177, %178, %cst_67 {dimension_numbers = #tpu.dot_dimension_numbers<[1], [0], [0], [1], [0, 0, 1, 1], [], []>} : vector<2x128xf32>, vector<128x128xf32>, vector<2x128xf32> -> vector<2x128xf32>
    %c0_68 = arith.constant 0 : index
    %c0_69 = arith.constant 0 : index
    %180 = vector.load %arg8[%c0_68, %c0_69] : memref<1x128xf32, #tpu.memory_space<vmem>>, vector<1x128xf32>
    %181 = vector.broadcast %180 : vector<1x128xf32> to vector<2x128xf32>
    %182 = arith.addf %179, %181 : vector<2x128xf32>
    %c0_70 = arith.constant 0 : index
    %c640 = arith.constant 640 : index
    %183 = vector.load %arg9[%c0_70, %c640] : memref<2x1024xf32, #tpu.memory_space<vmem>>, vector<2x128xf32>
    tpu.vector_store %arg9[%c0_70, %c640], %182 {strides = array<i32>} : memref<2x1024xf32, #tpu.memory_space<vmem>>, vector<2x128xf32>,
    %184 = vector.extract_strided_slice %17 {offsets = [0, 768], sizes = [2, 128], strides = [1, 1]} : vector<2x1024xf32> to vector<2x128xf32>
    %185 = vector.broadcast %84 : vector<1x128xf32> to vector<2x128xf32>
    %186 = arith.mulf %184, %185 : vector<2x128xf32>
    %187 = vector.broadcast %87 : vector<1x128xf32> to vector<2x128xf32>
    %188 = arith.addf %186, %187 : vector<2x128xf32>
    %cst_71 = arith.constant 0.000000e+00 : f32
    %189 = vector.broadcast %cst_71 : f32 to vector<2x128xf32>
    %190 = arith.cmpf oge, %188, %189 : vector<2x128xf32>
    %cst_72 = arith.constant 2.000000e-01 : f32
    %191 = vector.broadcast %cst_72 : f32 to vector<2x128xf32>
    %192 = arith.mulf %191, %188 : vector<2x128xf32>
    %193 = arith.select %190, %188, %192 : vector<2x128xi1>, vector<2x128xf32>
    %c0_73 = arith.constant 0 : index
    %c0_74 = arith.constant 0 : index
    %194 = vector.load %arg7[%c0_73, %c0_74] : memref<128x128xf32, #tpu.memory_space<vmem>>, vector<128x128xf32>
    %cst_75 = arith.constant dense<0.000000e+00> : vector<2x128xf32>
    %195 = tpu.matmul %193, %194, %cst_75 {dimension_numbers = #tpu.dot_dimension_numbers<[1], [0], [0], [1], [0, 0, 1, 1], [], []>} : vector<2x128xf32>, vector<128x128xf32>, vector<2x128xf32> -> vector<2x128xf32>
    %c0_76 = arith.constant 0 : index
    %c0_77 = arith.constant 0 : index
    %196 = vector.load %arg8[%c0_76, %c0_77] : memref<1x128xf32, #tpu.memory_space<vmem>>, vector<1x128xf32>
    %197 = vector.broadcast %196 : vector<1x128xf32> to vector<2x128xf32>
    %198 = arith.addf %195, %197 : vector<2x128xf32>
    %c0_78 = arith.constant 0 : index
    %c768 = arith.constant 768 : index
    %199 = vector.load %arg9[%c0_78, %c768] : memref<2x1024xf32, #tpu.memory_space<vmem>>, vector<2x128xf32>
    tpu.vector_store %arg9[%c0_78, %c768], %198 {strides = array<i32>} : memref<2x1024xf32, #tpu.memory_space<vmem>>, vector<2x128xf32>,
    %200 = vector.extract_strided_slice %17 {offsets = [0, 896], sizes = [2, 128], strides = [1, 1]} : vector<2x1024xf32> to vector<2x128xf32>
    %201 = vector.broadcast %84 : vector<1x128xf32> to vector<2x128xf32>
    %202 = arith.mulf %200, %201 : vector<2x128xf32>
    %203 = vector.broadcast %87 : vector<1x128xf32> to vector<2x128xf32>
    %204 = arith.addf %202, %203 : vector<2x128xf32>
    %cst_79 = arith.constant 0.000000e+00 : f32
    %205 = vector.broadcast %cst_79 : f32 to vector<2x128xf32>
    %206 = arith.cmpf oge, %204, %205 : vector<2x128xf32>
    %cst_80 = arith.constant 2.000000e-01 : f32
    %207 = vector.broadcast %cst_80 : f32 to vector<2x128xf32>
    %208 = arith.mulf %207, %204 : vector<2x128xf32>
    %209 = arith.select %206, %204, %208 : vector<2x128xi1>, vector<2x128xf32>
    %c0_81 = arith.constant 0 : index
    %c0_82 = arith.constant 0 : index
    %210 = vector.load %arg7[%c0_81, %c0_82] : memref<128x128xf32, #tpu.memory_space<vmem>>, vector<128x128xf32>
    %cst_83 = arith.constant dense<0.000000e+00> : vector<2x128xf32>
    %211 = tpu.matmul %209, %210, %cst_83 {dimension_numbers = #tpu.dot_dimension_numbers<[1], [0], [0], [1], [0, 0, 1, 1], [], []>} : vector<2x128xf32>, vector<128x128xf32>, vector<2x128xf32> -> vector<2x128xf32>
    %c0_84 = arith.constant 0 : index
    %c0_85 = arith.constant 0 : index
    %212 = vector.load %arg8[%c0_84, %c0_85] : memref<1x128xf32, #tpu.memory_space<vmem>>, vector<1x128xf32>
    %213 = vector.broadcast %212 : vector<1x128xf32> to vector<2x128xf32>
    %214 = arith.addf %211, %213 : vector<2x128xf32>
    %c0_86 = arith.constant 0 : index
    %c896 = arith.constant 896 : index
    %215 = vector.load %arg9[%c0_86, %c896] : memref<2x1024xf32, #tpu.memory_space<vmem>>, vector<2x128xf32>
    tpu.vector_store %arg9[%c0_86, %c896], %214 {strides = array<i32>} : memref<2x1024xf32, #tpu.memory_space<vmem>>, vector<2x128xf32>,
    return
  }
}

</mosaic_0001>

<bundles_post_ra>
// kernel: autoencoder_out_forward.1
= control target key start
LH: loop header
LB: loop body
LE: loop exit
PB: predicated region body
PF: predicated region fallthrough
CT: control target
= control target key end

     0   :  { %14 = vsyncpa [#allocation3], 0  ;;  %s1773_s0 = inlined_call_operand.hbm [shape: f32[2,32], index: 0, kind: input, shape index: {}]   ;;  %s1774_s1 = inlined_call_operand.hbm [shape: f32[32,256], index: 1, kind: input, shape index: {}]   ;;  %s1775_s2 = inlined_call_operand.hbm [shape: f32[1,256], index: 2, kind: input, shape index: {}]   ;;  %s1776_s3 = inlined_call_operand.hbm [shape: f32[256,1024], index: 3, kind: input, shape index: {}]   ;;  %s1777_s4 = inlined_call_operand.hbm [shape: f32[1,1024], index: 4, kind: input, shape index: {}]   ;;  %s1778_s5 = inlined_call_operand.vmem [shape: f32[1,128], index: 5, kind: input, shape index: {}]   ;;  %s1779_s6 = inlined_call_operand.vmem [shape: f32[1,128], index: 6, kind: input, shape index: {}]   ;;  %s1780_s7 = inlined_call_operand.hbm [shape: f32[128,128], index: 7, kind: input, shape index: {}]   ;;  %s1781_s8 = inlined_call_operand.vmem [shape: f32[1,128], index: 8, kind: input, shape index: {}]   ;;  %s1782_s9 = inlined_call_operand.vmem [shape: f32[2,1024], index: 9, kind: output, shape index: {}]  }
   0x1   :  { %15 = vsyncpa [#allocation5], 0 }
   0x2   :  { %16 = vsyncpa [#allocation8], 0  ;;  %s33_s11 = sshll.u32 %s1774_s1, 4  ;;  %s34_s11 = int_to_ptr.hbm [resolvable:$true] %s33_s11 }
   0x3   :  { %17 = vsyncpa [#allocation11], 0  ;;  %s1406_s12 = smov [#allocation4]   ;;  %s57_s16 = sshll.u32 %s1776_s3, 4  ;;  %s58_s16 = int_to_ptr.hbm [resolvable:$true] %s57_s16 }
   0x4   :  { %s35_s13 = sshll.u32 %s1406_s12, 4  ;;  %s1407_s17 = smov 256   ;;  %s36_s13 = int_to_ptr.vmem [resolvable:$true] %s35_s13 }
   0x5   :  { %s1408_s18 = smov 16   ;;  %s1409_s19 = smov [#allocation7]  }
   0x6   :  { %41 = dma.hbm_to_vmem [thread:$0]  %s34_s11, 1024, %s36_s13, [#allocation5], %s1407_s17, %s1407_s17, %s1408_s18  }
   0x7   :  { %s59_s20 = sshll.u32 %s1409_s19, 4  ;;  %s1410_s21 = smov 1024   ;;  %s60_s20 = int_to_ptr.vmem [resolvable:$true] %s59_s20 }
   0x8   :  { %s1411_s22 = smov 64   ;;  %s23_s24 = sshll.u32 %s1773_s0, 4  ;;  %s24_s24 = int_to_ptr.hbm [resolvable:$true] %s23_s24 }
   0x9   :  { %65 = dma.hbm_to_vmem [thread:$0]  %s58_s16, 32768, %s60_s20, [#allocation8], %s1410_s21, %s1410_s21, %s1411_s22  }
   0xa   :  { %s1412_s25 = smov [#allocation2]   ;;  %s47_s28 = sshll.u32 %s1775_s2, 4  ;;  %s48_s28 = int_to_ptr.hbm [resolvable:$true] %s47_s28 }
   0xb   :  { %s25_s26 = sshll.u32 %s1412_s25, 4  ;;  %s1413_s29 = smov [#allocation6]   ;;  %s26_s26 = int_to_ptr.vmem [resolvable:$true] %s25_s26 }
   0xc   :  { %28 = dma.hbm_to_vmem [thread:$0]  %s24_s24, 32, %s26_s26, [#allocation3]  }
   0xd   :  { %s49_s30 = sshll.u32 %s1413_s29, 4  ;;  %s71_s12 = sshll.u32 %s1777_s4, 4  ;;  %s50_s30 = int_to_ptr.vmem [resolvable:$true] %s49_s30  ;;  %s72_s12 = int_to_ptr.hbm [resolvable:$true] %s71_s12 }
   0xe   :  { %52 = dma.hbm_to_vmem [thread:$0]  %s48_s28, 32, %s50_s30, [#allocation5]  }
   0xf   :  { %s85_s14 = sshll.u32 %s1780_s7, 4  ;;  %s1414_s15 = smov [#allocation9]   ;;  %s86_s14 = int_to_ptr.hbm [resolvable:$true] %s85_s14 }
  0x10   :  { %s73_s16 = sshll.u32 %s1414_s15, 4  ;;  %s1415_s2 = smov [#allocation10]   ;;  %s74_s16 = int_to_ptr.vmem [resolvable:$true] %s73_s16 }
  0x11   :  { %76 = dma.hbm_to_vmem [thread:$0]  %s72_s12, 128, %s74_s16, [#allocation8]  }
  0x12   :  { %s87_s17 = sshll.u32 %s1415_s2, 4  ;;  %s1416_s18 = smov 128   ;;  %s88_s17 = int_to_ptr.vmem [resolvable:$true] %s87_s17 }
  0x13   :  { %s1417_s19 = smov 8  }
  0x14   :  { %93 = dma.hbm_to_vmem [thread:$0]  %s86_s14, 2048, %s88_s17, [#allocation11], %s1416_s18, %s1416_s18, %s1417_s19  }
  0x15   :  { %1398 = dma.done.wait [#allocation3], 32  }
  0x16   :  { %1399 = vsyncadd [#allocation3], 4294967264 }
  0x17   :  { %1400 = dma.done.wait [#allocation5], 1056  }
  0x18   :  { %1401 = vsyncadd [#allocation5], 4294966240 }
  0x19   :  { %1402 = dma.done.wait [#allocation8], 32896  }
  0x1a   :  { %1403 = vsyncadd [#allocation8], 4294934400 }
  0x1b   :  { %1404 = dma.done.wait [#allocation11], 2048  }
  0x1c   :  { %1405 = vsyncadd [#allocation11], 4294965248  ;;  %v127_v0 = vld [vmem:[#allocation4 + $0x30] sm:$0xff]  ;;  %v128_v1 = vld [vmem:[#allocation4 + $0x38] sm:$0xff]  ;;  %vm135_vm0 = vcmask 261120   ;;  %vm788_vm1 = vcmask 1041408  }
  0x1d   :  { %v125_v2 = vld [vmem:[#allocation4 + $0x20] sm:$0xff]  ;;  %151 = vmatpush.msra.mxu0 %v127_v0  ;;  %171 = vmatpush.msra.mxu1 %v128_v1  ;;  %v126_v3 = vld [vmem:[#allocation4 + $0x28] sm:$0xff]  ;;  %v123_v4 = vld [vmem:[#allocation4 + $0x10] sm:$0xff] }
  0x1e   :  { %v124_v5 = vld [vmem:[#allocation4 + $0x18] sm:$0xff]  ;;  %v121_v6 = vld [vmem:[#allocation4] sm:$0xff]  ;;  %v122_v9 = vld [vmem:[#allocation4 + $0x8] sm:$0xff] }
  0x1f   :  { %152 = vmatpush.msra.mxu0 %v125_v2  ;;  %172 = vmatpush.msra.mxu1 %v126_v3  ;;  %v307_v7 = vld [vmem:[#allocation7 + $0x3c0] sm:$0xff]  ;;  %v120_v12 = vld [vmem:[#allocation2] sm:$0x3]  ;;  %v308_v13 = vld [vmem:[#allocation7 + $0x3c8] sm:$0xff] }
  0x20   :  { %v435_v8 = vld [vmem:[#allocation7 + $0x7c0] sm:$0xff]  ;;  %461 = vmatpush.msra.mxu2 %v307_v7  ;;  %v436_v14 = vld [vmem:[#allocation7 + $0x7c8] sm:$0xff] }
  0x21   :  { %481 = vmatpush.msra.mxu3 %v435_v8  ;;  %v299_v10 = vld [vmem:[#allocation7 + $0x380] sm:$0xff]  ;;  %153 = vmatpush.msra.mxu0 %v123_v4  ;;  %v300_v17 = vld [vmem:[#allocation7 + $0x388] sm:$0xff] }
  0x22   :  { %v427_v11 = vld [vmem:[#allocation7 + $0x780] sm:$0xff]  ;;  %173 = vmatpush.msra.mxu1 %v124_v5  ;;  %462 = vmatpush.msra.mxu2 %v299_v10  ;;  %v428_v18 = vld [vmem:[#allocation7 + $0x788] sm:$0xff]  ;;  %v437_v10 = vld [vmem:[#allocation7 + $0x7d0] sm:$0xff] }
  0x23   :  { %482 = vmatpush.msra.mxu3 %v427_v11  ;;  %154 = vmatpush.msra.mxu0 %v121_v6  ;;  %v291_v15 = vld [vmem:[#allocation7 + $0x340] sm:$0xff]  ;;  %v292_v21 = vld [vmem:[#allocation7 + $0x348] sm:$0xff]  ;;  %v310_v11 = vld [vmem:[#allocation7 + $0x3d8] sm:$0xff] }
  0x24   :  { %174 = vmatpush.msra.mxu1 %v122_v9  ;;  %v419_v16 = vld [vmem:[#allocation7 + $0x740] sm:$0xff]  ;;  %1226 = vmatmul.msk.f32.vlgmr.msra.gmra.mxu0 %vm135_vm0, %v120_v12  ;;  %v420_v22 = vld [vmem:[#allocation7 + $0x748] sm:$0xff]  ;;  %v309_v9 = vld [vmem:[#allocation7 + $0x3d0] sm:$0xff] }
  0x25   :  { %1227 = vmatmul.msk.f32.vlgmr.msra.gmra.mxu1 %vm135_vm0, %v120_v12  ;;  %501 = vmatpush.msrb.mxu0 %v308_v13  ;;  %v283_v19 = vld [vmem:[#allocation7 + $0x300] sm:$0xff]  ;;  %v284_v25 = vld [vmem:[#allocation7 + $0x308] sm:$0xff]  ;;  %v438_v12 = vld [vmem:[#allocation7 + $0x7d8] sm:$0xff] }
  0x26   :  { %521 = vmatpush.msrb.mxu1 %v436_v14  ;;  %v411_v20 = vld [vmem:[#allocation7 + $0x700] sm:$0xff]  ;;  %463 = vmatpush.msra.mxu2 %v291_v15  ;;  %v412_v26 = vld [vmem:[#allocation7 + $0x708] sm:$0xff]  ;;  %v301_v13 = vld [vmem:[#allocation7 + $0x390] sm:$0xff] }
  0x27   :  { %483 = vmatpush.msra.mxu3 %v419_v16  ;;  %502 = vmatpush.msrb.mxu0 %v300_v17  ;;  %v275_v23 = vld [vmem:[#allocation7 + $0x2c0] sm:$0xff]  ;;  %v276_v29 = vld [vmem:[#allocation7 + $0x2c8] sm:$0xff]  ;;  %v429_v14 = vld [vmem:[#allocation7 + $0x790] sm:$0xff] }
  0x28   :  { %522 = vmatpush.msrb.mxu1 %v428_v18  ;;  %v403_v24 = vld [vmem:[#allocation7 + $0x6c0] sm:$0xff]  ;;  %464 = vmatpush.msra.mxu2 %v283_v19  ;;  %v404_v30 = vld [vmem:[#allocation7 + $0x6c8] sm:$0xff]  ;;  %v302_v15 = vld [vmem:[#allocation7 + $0x398] sm:$0xff] }
  0x29   :  { %484 = vmatpush.msra.mxu3 %v411_v20  ;;  %503 = vmatpush.msrb.mxu0 %v292_v21  ;;  %v267_v27 = vld [vmem:[#allocation7 + $0x280] sm:$0xff]  ;;  %v268_v33 = vld [vmem:[#allocation7 + $0x288] sm:$0xff]  ;;  %v430_v16 = vld [vmem:[#allocation7 + $0x798] sm:$0xff] }
  0x2a   :  { %523 = vmatpush.msrb.mxu1 %v420_v22  ;;  %v395_v28 = vld [vmem:[#allocation7 + $0x680] sm:$0xff]  ;;  %465 = vmatpush.msra.mxu2 %v275_v23  ;;  %v396_v34 = vld [vmem:[#allocation7 + $0x688] sm:$0xff]  ;;  %v293_v17 = vld [vmem:[#allocation7 + $0x350] sm:$0xff] }
  0x2b   :  { %485 = vmatpush.msra.mxu3 %v403_v24  ;;  %504 = vmatpush.msrb.mxu0 %v284_v25  ;;  %v259_v31 = vld [vmem:[#allocation7 + $0x240] sm:$0xff]  ;;  %v260_v37 = vld [vmem:[#allocation7 + $0x248] sm:$0xff]  ;;  %v421_v18 = vld [vmem:[#allocation7 + $0x750] sm:$0xff] }
  0x2c   :  { %524 = vmatpush.msrb.mxu1 %v412_v26  ;;  %v387_v32 = vld [vmem:[#allocation7 + $0x640] sm:$0xff]  ;;  %466 = vmatpush.msra.mxu2 %v267_v27  ;;  %v388_v38 = vld [vmem:[#allocation7 + $0x648] sm:$0xff]  ;;  %v294_v19 = vld [vmem:[#allocation7 + $0x358] sm:$0xff] }
  0x2d   :  { %486 = vmatpush.msra.mxu3 %v395_v28  ;;  %505 = vmatpush.msrb.mxu0 %v276_v29  ;;  %v251_v35 = vld [vmem:[#allocation7 + $0x200] sm:$0xff]  ;;  %v252_v41 = vld [vmem:[#allocation7 + $0x208] sm:$0xff]  ;;  %v422_v20 = vld [vmem:[#allocation7 + $0x758] sm:$0xff] }
  0x2e   :  { %525 = vmatpush.msrb.mxu1 %v404_v30  ;;  %v379_v36 = vld [vmem:[#allocation7 + $0x600] sm:$0xff]  ;;  %467 = vmatpush.msra.mxu2 %v259_v31  ;;  %v380_v42 = vld [vmem:[#allocation7 + $0x608] sm:$0xff]  ;;  %v285_v21 = vld [vmem:[#allocation7 + $0x310] sm:$0xff] }
  0x2f   :  { %487 = vmatpush.msra.mxu3 %v387_v32  ;;  %506 = vmatpush.msrb.mxu0 %v268_v33  ;;  %v243_v39 = vld [vmem:[#allocation7 + $0x1c0] sm:$0xff]  ;;  %v244_v45 = vld [vmem:[#allocation7 + $0x1c8] sm:$0xff]  ;;  %v413_v22 = vld [vmem:[#allocation7 + $0x710] sm:$0xff] }
  0x30   :  { %526 = vmatpush.msrb.mxu1 %v396_v34  ;;  %v371_v40 = vld [vmem:[#allocation7 + $0x5c0] sm:$0xff]  ;;  %468 = vmatpush.msra.mxu2 %v251_v35  ;;  %v372_v46 = vld [vmem:[#allocation7 + $0x5c8] sm:$0xff]  ;;  %v286_v23 = vld [vmem:[#allocation7 + $0x318] sm:$0xff] }
  0x31   :  { %488 = vmatpush.msra.mxu3 %v379_v36  ;;  %507 = vmatpush.msrb.mxu0 %v260_v37  ;;  %v235_v43 = vld [vmem:[#allocation7 + $0x180] sm:$0xff]  ;;  %v236_v49 = vld [vmem:[#allocation7 + $0x188] sm:$0xff]  ;;  %v414_v24 = vld [vmem:[#allocation7 + $0x718] sm:$0xff] }
  0x32   :  { %527 = vmatpush.msrb.mxu1 %v388_v38  ;;  %v363_v44 = vld [vmem:[#allocation7 + $0x580] sm:$0xff]  ;;  %469 = vmatpush.msra.mxu2 %v243_v39  ;;  %v364_v50 = vld [vmem:[#allocation7 + $0x588] sm:$0xff]  ;;  %v277_v25 = vld [vmem:[#allocation7 + $0x2d0] sm:$0xff] }
  0x33   :  { %489 = vmatpush.msra.mxu3 %v371_v40  ;;  %508 = vmatpush.msrb.mxu0 %v252_v41  ;;  %v227_v47 = vld [vmem:[#allocation7 + $0x140] sm:$0xff]  ;;  %v228_v53 = vld [vmem:[#allocation7 + $0x148] sm:$0xff]  ;;  %v405_v26 = vld [vmem:[#allocation7 + $0x6d0] sm:$0xff] }
  0x34   :  { %528 = vmatpush.msrb.mxu1 %v380_v42  ;;  %v355_v48 = vld [vmem:[#allocation7 + $0x540] sm:$0xff]  ;;  %470 = vmatpush.msra.mxu2 %v235_v43  ;;  %v356_v54 = vld [vmem:[#allocation7 + $0x548] sm:$0xff]  ;;  %v278_v27 = vld [vmem:[#allocation7 + $0x2d8] sm:$0xff] }
  0x35   :  { %490 = vmatpush.msra.mxu3 %v363_v44  ;;  %509 = vmatpush.msrb.mxu0 %v244_v45  ;;  %v219_v51 = vld [vmem:[#allocation7 + $0x100] sm:$0xff]  ;;  %v220_v57 = vld [vmem:[#allocation7 + $0x108] sm:$0xff]  ;;  %v406_v28 = vld [vmem:[#allocation7 + $0x6d8] sm:$0xff] }
  0x36   :  { %529 = vmatpush.msrb.mxu1 %v372_v46  ;;  %v347_v52 = vld [vmem:[#allocation7 + $0x500] sm:$0xff]  ;;  %471 = vmatpush.msra.mxu2 %v227_v47  ;;  %v348_v58 = vld [vmem:[#allocation7 + $0x508] sm:$0xff]  ;;  %v269_v29 = vld [vmem:[#allocation7 + $0x290] sm:$0xff] }
  0x37   :  { %491 = vmatpush.msra.mxu3 %v355_v48  ;;  %510 = vmatpush.msrb.mxu0 %v236_v49  ;;  %v211_v55 = vld [vmem:[#allocation7 + $0xc0] sm:$0xff]  ;;  %v212_v61 = vld [vmem:[#allocation7 + $0xc8] sm:$0xff]  ;;  %v397_v30 = vld [vmem:[#allocation7 + $0x690] sm:$0xff] }
  0x38   :  { %530 = vmatpush.msrb.mxu1 %v364_v50  ;;  %v339_v56 = vld [vmem:[#allocation7 + $0x4c0] sm:$0xff]  ;;  %472 = vmatpush.msra.mxu2 %v219_v51  ;;  %v340_v62 = vld [vmem:[#allocation7 + $0x4c8] sm:$0xff]  ;;  %v270_v31 = vld [vmem:[#allocation7 + $0x298] sm:$0xff] }
  0x39   :  { %492 = vmatpush.msra.mxu3 %v347_v52  ;;  %511 = vmatpush.msrb.mxu0 %v228_v53  ;;  %v203_v59 = vld [vmem:[#allocation7 + $0x80] sm:$0xff]  ;;  %v204_v1 = vld [vmem:[#allocation7 + $0x88] sm:$0xff]  ;;  %v398_v32 = vld [vmem:[#allocation7 + $0x698] sm:$0xff] }
  0x3a   :  { %531 = vmatpush.msrb.mxu1 %v356_v54  ;;  %v331_v60 = vld [vmem:[#allocation7 + $0x480] sm:$0xff]  ;;  %473 = vmatpush.msra.mxu2 %v211_v55  ;;  %v332_v2 = vld [vmem:[#allocation7 + $0x488] sm:$0xff]  ;;  %v261_v33 = vld [vmem:[#allocation7 + $0x250] sm:$0xff] }
  0x3b   :  { %493 = vmatpush.msra.mxu3 %v339_v56  ;;  %512 = vmatpush.msrb.mxu0 %v220_v57  ;;  %v195_v63 = vld [vmem:[#allocation7 + $0x40] sm:$0xff]  ;;  %v196_v3 = vld [vmem:[#allocation7 + $0x48] sm:$0xff]  ;;  %v389_v34 = vld [vmem:[#allocation7 + $0x650] sm:$0xff] }
  0x3c   :  { %532 = vmatpush.msrb.mxu1 %v348_v58  ;;  %v323_v0 = vld [vmem:[#allocation7 + $0x440] sm:$0xff]  ;;  %474 = vmatpush.msra.mxu2 %v203_v59  ;;  %v324_v4 = vld [vmem:[#allocation7 + $0x448] sm:$0xff]  ;;  %v262_v35 = vld [vmem:[#allocation7 + $0x258] sm:$0xff] }
  0x3d   :  { %494 = vmatpush.msra.mxu3 %v331_v60  ;;  %513 = vmatpush.msrb.mxu0 %v212_v61  ;;  %v187_v5 = vld [vmem:[#allocation7] sm:$0xff]  ;;  %v188_v7 = vld [vmem:[#allocation7 + $0x8] sm:$0xff]  ;;  %v390_v36 = vld [vmem:[#allocation7 + $0x658] sm:$0xff] }
  0x3e   :  { %533 = vmatpush.msrb.mxu1 %v340_v62  ;;  %v315_v6 = vld [vmem:[#allocation7 + $0x400] sm:$0xff]  ;;  %475 = vmatpush.msra.mxu2 %v195_v63  ;;  %v316_v8 = vld [vmem:[#allocation7 + $0x408] sm:$0xff]  ;;  %v253_v37 = vld [vmem:[#allocation7 + $0x210] sm:$0xff] }
  0x3f   :  { %495 = vmatpush.msra.mxu3 %v323_v0  ;;  %514 = vmatpush.msrb.mxu0 %v204_v1  ;;  %v381_v38 = vld [vmem:[#allocation7 + $0x610] sm:$0xff]  ;;  %v254_v39 = vld [vmem:[#allocation7 + $0x218] sm:$0xff] }
  0x40   :  { %534 = vmatpush.msrb.mxu1 %v332_v2  ;;  %476 = vmatpush.msra.mxu2 %v187_v5  ;;  %v382_v40 = vld [vmem:[#allocation7 + $0x618] sm:$0xff]  ;;  %v245_v41 = vld [vmem:[#allocation7 + $0x1d0] sm:$0xff] }
  0x41   :  { %496 = vmatpush.msra.mxu3 %v315_v6  ;;  %515 = vmatpush.msrb.mxu0 %v196_v3  ;;  %v373_v42 = vld [vmem:[#allocation7 + $0x5d0] sm:$0xff]  ;;  %v246_v43 = vld [vmem:[#allocation7 + $0x1d8] sm:$0xff] }
  0x42   :  { %535 = vmatpush.msrb.mxu1 %v324_v4  ;;  %541 = vmatpush.msrb.mxu2 %v309_v9  ;;  %v374_v44 = vld [vmem:[#allocation7 + $0x5d8] sm:$0xff]  ;;  %v237_v45 = vld [vmem:[#allocation7 + $0x190] sm:$0xff] }
  0x43   :  { %561 = vmatpush.msrb.mxu3 %v437_v10  ;;  %516 = vmatpush.msrb.mxu0 %v188_v7  ;;  %v365_v46 = vld [vmem:[#allocation7 + $0x590] sm:$0xff]  ;;  %v238_v47 = vld [vmem:[#allocation7 + $0x198] sm:$0xff] }
  0x44   :  { %536 = vmatpush.msrb.mxu1 %v316_v8  ;;  %542 = vmatpush.msrb.mxu2 %v301_v13  ;;  %v366_v48 = vld [vmem:[#allocation7 + $0x598] sm:$0xff]  ;;  %v229_v49 = vld [vmem:[#allocation7 + $0x150] sm:$0xff] }
  0x45   :  { %581 = vmatpush.msra.mxu0 %v310_v11  ;;  %562 = vmatpush.msrb.mxu3 %v429_v14  ;;  %v357_v50 = vld [vmem:[#allocation7 + $0x550] sm:$0xff]  ;;  %v230_v51 = vld [vmem:[#allocation7 + $0x158] sm:$0xff] }
  0x46   :  { %601 = vmatpush.msra.mxu1 %v438_v12  ;;  %543 = vmatpush.msrb.mxu2 %v293_v17  ;;  %v358_v52 = vld [vmem:[#allocation7 + $0x558] sm:$0xff]  ;;  %v221_v53 = vld [vmem:[#allocation7 + $0x110] sm:$0xff] }
  0x47   :  { %582 = vmatpush.msra.mxu0 %v302_v15  ;;  %563 = vmatpush.msrb.mxu3 %v421_v18  ;;  %v349_v54 = vld [vmem:[#allocation7 + $0x510] sm:$0xff]  ;;  %v222_v55 = vld [vmem:[#allocation7 + $0x118] sm:$0xff] }
  0x48   :  { %602 = vmatpush.msra.mxu1 %v430_v16  ;;  %544 = vmatpush.msrb.mxu2 %v285_v21  ;;  %v350_v56 = vld [vmem:[#allocation7 + $0x518] sm:$0xff]  ;;  %v213_v57 = vld [vmem:[#allocation7 + $0xd0] sm:$0xff] }
  0x49   :  { %583 = vmatpush.msra.mxu0 %v294_v19  ;;  %564 = vmatpush.msrb.mxu3 %v413_v22  ;;  %v341_v58 = vld [vmem:[#allocation7 + $0x4d0] sm:$0xff]  ;;  %v214_v59 = vld [vmem:[#allocation7 + $0xd8] sm:$0xff] }
  0x4a   :  { %603 = vmatpush.msra.mxu1 %v422_v20  ;;  %545 = vmatpush.msrb.mxu2 %v277_v25  ;;  %v342_v60 = vld [vmem:[#allocation7 + $0x4d8] sm:$0xff]  ;;  %v205_v61 = vld [vmem:[#allocation7 + $0x90] sm:$0xff]  ;;  %v439_v25 = vld [vmem:[#allocation7 + $0x7e0] sm:$0xff] }
  0x4b   :  { %584 = vmatpush.msra.mxu0 %v286_v23  ;;  %565 = vmatpush.msrb.mxu3 %v405_v26  ;;  %v333_v62 = vld [vmem:[#allocation7 + $0x490] sm:$0xff]  ;;  %v206_v63 = vld [vmem:[#allocation7 + $0x98] sm:$0xff]  ;;  %v312_v26 = vld [vmem:[#allocation7 + $0x3e8] sm:$0xff] }
  0x4c   :  { %604 = vmatpush.msra.mxu1 %v414_v24  ;;  %546 = vmatpush.msrb.mxu2 %v269_v29  ;;  %v334_v0 = vld [vmem:[#allocation7 + $0x498] sm:$0xff]  ;;  %v197_v1 = vld [vmem:[#allocation7 + $0x50] sm:$0xff]  ;;  %v311_v24 = vld [vmem:[#allocation7 + $0x3e0] sm:$0xff] }
  0x4d   :  { %585 = vmatpush.msra.mxu0 %v278_v27  ;;  %566 = vmatpush.msrb.mxu3 %v397_v30  ;;  %v325_v2 = vld [vmem:[#allocation7 + $0x450] sm:$0xff]  ;;  %v198_v3 = vld [vmem:[#allocation7 + $0x58] sm:$0xff]  ;;  %v440_v27 = vld [vmem:[#allocation7 + $0x7e8] sm:$0xff] }
  0x4e   :  { %605 = vmatpush.msra.mxu1 %v406_v28  ;;  %547 = vmatpush.msrb.mxu2 %v261_v33  ;;  %v326_v4 = vld [vmem:[#allocation7 + $0x458] sm:$0xff]  ;;  %v189_v5 = vld [vmem:[#allocation7 + $0x10] sm:$0xff]  ;;  %v303_v28 = vld [vmem:[#allocation7 + $0x3a0] sm:$0xff] }
  0x4f   :  { %586 = vmatpush.msra.mxu0 %v270_v31  ;;  %567 = vmatpush.msrb.mxu3 %v389_v34  ;;  %v317_v6 = vld [vmem:[#allocation7 + $0x410] sm:$0xff]  ;;  %v190_v7 = vld [vmem:[#allocation7 + $0x18] sm:$0xff]  ;;  %v431_v29 = vld [vmem:[#allocation7 + $0x7a0] sm:$0xff] }
  0x50   :  { %606 = vmatpush.msra.mxu1 %v398_v32  ;;  %548 = vmatpush.msrb.mxu2 %v253_v37  ;;  %v318_v8 = vld [vmem:[#allocation7 + $0x418] sm:$0xff]  ;;  %v304_v30 = vld [vmem:[#allocation7 + $0x3a8] sm:$0xff]  ;;  %v295_v32 = vld [vmem:[#allocation7 + $0x360] sm:$0xff] }
  0x51   :  { %587 = vmatpush.msra.mxu0 %v262_v35  ;;  %568 = vmatpush.msrb.mxu3 %v381_v38  ;;  %v129_v9 = vld [vmem:[#allocation6] sm:$0x3]  ;;  %v432_v31 = vld [vmem:[#allocation7 + $0x7a8] sm:$0xff]  ;;  %v423_v33 = vld [vmem:[#allocation7 + $0x760] sm:$0xff] }
  0x52   :  { %607 = vmatpush.msra.mxu1 %v390_v36  ;;  %549 = vmatpush.msrb.mxu2 %v245_v41  ;;  %v131_v10 = vperm.slane %v129_v9, 0  ;;  %v132_v11 = vperm.slane %v129_v9, 1  ;;  %v296_v34 = vld [vmem:[#allocation7 + $0x368] sm:$0xff]  ;;  %v287_v36 = vld [vmem:[#allocation7 + $0x320] sm:$0xff] }
  0x53   :  { %588 = vmatpush.msra.mxu0 %v254_v39  ;;  %569 = vmatpush.msrb.mxu3 %v373_v42  ;;  %v424_v35 = vld [vmem:[#allocation7 + $0x768] sm:$0xff]  ;;  %v415_v37 = vld [vmem:[#allocation7 + $0x720] sm:$0xff] }
  0x54   :  { %608 = vmatpush.msra.mxu1 %v382_v40  ;;  %550 = vmatpush.msrb.mxu2 %v237_v45  ;;  %v288_v38 = vld [vmem:[#allocation7 + $0x328] sm:$0xff]  ;;  %v279_v40 = vld [vmem:[#allocation7 + $0x2e0] sm:$0xff] }
  0x55   :  { %589 = vmatpush.msra.mxu0 %v246_v43  ;;  %570 = vmatpush.msrb.mxu3 %v365_v46  ;;  %v416_v39 = vld [vmem:[#allocation7 + $0x728] sm:$0xff]  ;;  %v407_v41 = vld [vmem:[#allocation7 + $0x6e0] sm:$0xff] }
  0x56   :  { %609 = vmatpush.msra.mxu1 %v374_v44  ;;  %551 = vmatpush.msrb.mxu2 %v229_v49  ;;  %v280_v42 = vld [vmem:[#allocation7 + $0x2e8] sm:$0xff]  ;;  %v271_v44 = vld [vmem:[#allocation7 + $0x2a0] sm:$0xff] }
  0x57   :  { %590 = vmatpush.msra.mxu0 %v238_v47  ;;  %571 = vmatpush.msrb.mxu3 %v357_v50  ;;  %v408_v43 = vld [vmem:[#allocation7 + $0x6e8] sm:$0xff]  ;;  %v399_v45 = vld [vmem:[#allocation7 + $0x6a0] sm:$0xff] }
  0x58   :  { %610 = vmatpush.msra.mxu1 %v366_v48  ;;  %552 = vmatpush.msrb.mxu2 %v221_v53  ;;  %v272_v46 = vld [vmem:[#allocation7 + $0x2a8] sm:$0xff]  ;;  %v263_v48 = vld [vmem:[#allocation7 + $0x260] sm:$0xff] }
  0x59   :  { %591 = vmatpush.msra.mxu0 %v230_v51  ;;  %572 = vmatpush.msrb.mxu3 %v349_v54  ;;  %v400_v47 = vld [vmem:[#allocation7 + $0x6a8] sm:$0xff]  ;;  %v391_v49 = vld [vmem:[#allocation7 + $0x660] sm:$0xff] }
  0x5a   :  { %611 = vmatpush.msra.mxu1 %v358_v52  ;;  %553 = vmatpush.msrb.mxu2 %v213_v57  ;;  %v264_v50 = vld [vmem:[#allocation7 + $0x268] sm:$0xff]  ;;  %v255_v52 = vld [vmem:[#allocation7 + $0x220] sm:$0xff] }
  0x5b   :  { %592 = vmatpush.msra.mxu0 %v222_v55  ;;  %573 = vmatpush.msrb.mxu3 %v341_v58  ;;  %v392_v51 = vld [vmem:[#allocation7 + $0x668] sm:$0xff]  ;;  %v383_v53 = vld [vmem:[#allocation7 + $0x620] sm:$0xff] }
  0x5c   :  { %612 = vmatpush.msra.mxu1 %v350_v56  ;;  %554 = vmatpush.msrb.mxu2 %v205_v61  ;;  %v256_v54 = vld [vmem:[#allocation7 + $0x228] sm:$0xff]  ;;  %v247_v56 = vld [vmem:[#allocation7 + $0x1e0] sm:$0xff] }
  0x5d   :  { %593 = vmatpush.msra.mxu0 %v214_v59  ;;  %574 = vmatpush.msrb.mxu3 %v333_v62  ;;  %v384_v55 = vld [vmem:[#allocation7 + $0x628] sm:$0xff]  ;;  %v375_v57 = vld [vmem:[#allocation7 + $0x5e0] sm:$0xff] }
  0x5e   :  { %613 = vmatpush.msra.mxu1 %v342_v60  ;;  %555 = vmatpush.msrb.mxu2 %v197_v1  ;;  %v248_v58 = vld [vmem:[#allocation7 + $0x1e8] sm:$0xff]  ;;  %v239_v60 = vld [vmem:[#allocation7 + $0x1a0] sm:$0xff] }
  0x5f   :  { %594 = vmatpush.msra.mxu0 %v206_v63  ;;  %575 = vmatpush.msrb.mxu3 %v325_v2  ;;  %v376_v59 = vld [vmem:[#allocation7 + $0x5e8] sm:$0xff]  ;;  %v367_v61 = vld [vmem:[#allocation7 + $0x5a0] sm:$0xff] }
  0x60   :  { %614 = vmatpush.msra.mxu1 %v334_v0  ;;  %556 = vmatpush.msrb.mxu2 %v189_v5  ;;  %v240_v62 = vld [vmem:[#allocation7 + $0x1a8] sm:$0xff]  ;;  %v231_v0 = vld [vmem:[#allocation7 + $0x160] sm:$0xff] }
  0x61   :  { %595 = vmatpush.msra.mxu0 %v198_v3  ;;  %576 = vmatpush.msrb.mxu3 %v317_v6  ;;  %v368_v63 = vld [vmem:[#allocation7 + $0x5a8] sm:$0xff]  ;;  %v359_v1 = vld [vmem:[#allocation7 + $0x560] sm:$0xff] }
  0x62   :  { %615 = vmatpush.msra.mxu1 %v326_v4  ;;  %v232_v2 = vld [vmem:[#allocation7 + $0x168] sm:$0xff]  ;;  %v223_v4 = vld [vmem:[#allocation7 + $0x120] sm:$0xff] }
  0x63   :  { %596 = vmatpush.msra.mxu0 %v190_v7  ;;  %v360_v3 = vld [vmem:[#allocation7 + $0x568] sm:$0xff]  ;;  %v351_v5 = vld [vmem:[#allocation7 + $0x520] sm:$0xff] }
  0x64   :  { %616 = vmatpush.msra.mxu1 %v318_v8  ;;  %v224_v6 = vld [vmem:[#allocation7 + $0x128] sm:$0xff]  ;;  %v215_v8 = vld [vmem:[#allocation7 + $0xe0] sm:$0xff] }
  0x65   :  { %v352_v7 = vld [vmem:[#allocation7 + $0x528] sm:$0xff]  ;;  %v343_v9 = vld [vmem:[#allocation7 + $0x4e0] sm:$0xff] }
  0xa1   :  { %v156_v12 = vpop.f32.mrf.mxu0 }
  0xa2   :  { %v176_v13 = vpop.f32.mrf.mxu1  ;;  %v157_v14 = vadd.f32 %v156_v12, %v131_v10  ;;  %v216_v10 = vld [vmem:[#allocation7 + $0xe8] sm:$0xff]  ;;  %v207_v12 = vld [vmem:[#allocation7 + $0xa0] sm:$0xff] }
  0xa3   :  { %v177_v15 = vadd.f32 %v176_v13, %v132_v11  ;;  %v344_v11 = vld [vmem:[#allocation7 + $0x4e8] sm:$0xff]  ;;  %v335_v13 = vld [vmem:[#allocation7 + $0x4a0] sm:$0xff] }
  0xa4   :  { %v179_v16 = vmul.f32 0.5, %v157_v14  ;;  %v208_v14 = vld [vmem:[#allocation7 + $0xa8] sm:$0xff] }
  0xa5   :  { %v180_v17 = vmul.f32 0.5, %v177_v15  ;;  %v336_v15 = vld [vmem:[#allocation7 + $0x4a8] sm:$0xff] }
  0xa6   :  { %1248 = vtanh.f32 %v179_v16  ;;  %v199_v16 = vld [vmem:[#allocation7 + $0x60] sm:$0xff] }
  0xa7   :  { %1250 = vtanh.f32 %v180_v17  ;;  %v327_v17 = vld [vmem:[#allocation7 + $0x460] sm:$0xff] }
  0xac   :  { %v1249_v18 = vpop.eup %1248 }
  0xad   :  { %v1251_v19 = vpop.eup %1250  ;;  %v183_v20 = vmul.f32 0.5, %v1249_v18  ;;  %v200_v18 = vld [vmem:[#allocation7 + $0x68] sm:$0xff] }
  0xae   :  { %v184_v21 = vmul.f32 0.5, %v1251_v19  ;;  %v328_v19 = vld [vmem:[#allocation7 + $0x468] sm:$0xff] }
  0xaf   :  { %v1486_v22 = vadd.f32 0.5, %v183_v20  ;;  %v191_v20 = vld [vmem:[#allocation7 + $0x20] sm:$0xff] }
  0xb0   :  { %v1488_v23 = vadd.f32 0.5, %v184_v21  ;;  %v319_v21 = vld [vmem:[#allocation7 + $0x420] sm:$0xff] }
  0xb1   :  { %477 = vmatmul.f32.vlgmr.msra.gmra.mxu2 %v1486_v22  ;;  %517 = vmatmul.f32.vlgmr.msrb.gmra.mxu0 %v1486_v22 }
  0xb2   :  { %497 = vmatmul.f32.vlgmr.msra.gmra.mxu3 %v1488_v23  ;;  %537 = vmatmul.f32.vlgmr.msrb.gmra.mxu1 %v1488_v23 }
  0xb3   :  { %621 = vmatpush.msra.mxu2 %v311_v24  ;;  %641 = vmatpush.msra.mxu3 %v439_v25  ;;  %v192_v24 = vld [vmem:[#allocation7 + $0x28] sm:$0xff] }
  0xb4   :  { %661 = vmatpush.msrb.mxu0 %v312_v26  ;;  %681 = vmatpush.msrb.mxu1 %v440_v27  ;;  %v320_v25 = vld [vmem:[#allocation7 + $0x428] sm:$0xff]  ;;  %v313_v26 = vld [vmem:[#allocation7 + $0x3f0] sm:$0xff] }
  0xb5   :  { %622 = vmatpush.msra.mxu2 %v303_v28  ;;  %642 = vmatpush.msra.mxu3 %v431_v29  ;;  %v441_v27 = vld [vmem:[#allocation7 + $0x7f0] sm:$0xff]  ;;  %v314_v28 = vld [vmem:[#allocation7 + $0x3f8] sm:$0xff] }
  0xb6   :  { %662 = vmatpush.msrb.mxu0 %v304_v30  ;;  %682 = vmatpush.msrb.mxu1 %v432_v31  ;;  %v442_v29 = vld [vmem:[#allocation7 + $0x7f8] sm:$0xff]  ;;  %v305_v30 = vld [vmem:[#allocation7 + $0x3b0] sm:$0xff] }
  0xb7   :  { %623 = vmatpush.msra.mxu2 %v295_v32  ;;  %643 = vmatpush.msra.mxu3 %v423_v33  ;;  %v433_v31 = vld [vmem:[#allocation7 + $0x7b0] sm:$0xff]  ;;  %v306_v32 = vld [vmem:[#allocation7 + $0x3b8] sm:$0xff] }
  0xb8   :  { %663 = vmatpush.msrb.mxu0 %v296_v34  ;;  %683 = vmatpush.msrb.mxu1 %v424_v35  ;;  %v434_v33 = vld [vmem:[#allocation7 + $0x7b8] sm:$0xff]  ;;  %v297_v34 = vld [vmem:[#allocation7 + $0x370] sm:$0xff] }
  0xb9   :  { %624 = vmatpush.msra.mxu2 %v287_v36  ;;  %644 = vmatpush.msra.mxu3 %v415_v37  ;;  %v425_v35 = vld [vmem:[#allocation7 + $0x770] sm:$0xff]  ;;  %v298_v36 = vld [vmem:[#allocation7 + $0x378] sm:$0xff] }
  0xba   :  { %664 = vmatpush.msrb.mxu0 %v288_v38  ;;  %684 = vmatpush.msrb.mxu1 %v416_v39  ;;  %v426_v37 = vld [vmem:[#allocation7 + $0x778] sm:$0xff]  ;;  %v289_v38 = vld [vmem:[#allocation7 + $0x330] sm:$0xff] }
  0xbb   :  { %557 = vmatmul.f32.vlgmr.msrb.gmra.mxu2 %v1486_v22  ;;  %577 = vmatmul.f32.vlgmr.msrb.gmra.mxu3 %v1488_v23  ;;  %v417_v39 = vld [vmem:[#allocation7 + $0x730] sm:$0xff] }
  0xbc   :  { %597 = vmatmul.f32.vlgmr.msra.gmra.mxu0 %v1486_v22  ;;  %617 = vmatmul.f32.vlgmr.msra.gmra.mxu1 %v1488_v23 }
  0xbd   :  { %625 = vmatpush.msra.mxu2 %v279_v40  ;;  %645 = vmatpush.msra.mxu3 %v407_v41  ;;  %v290_v40 = vld [vmem:[#allocation7 + $0x338] sm:$0xff] }
  0xbe   :  { %665 = vmatpush.msrb.mxu0 %v280_v42  ;;  %685 = vmatpush.msrb.mxu1 %v408_v43  ;;  %v418_v41 = vld [vmem:[#allocation7 + $0x738] sm:$0xff]  ;;  %v281_v42 = vld [vmem:[#allocation7 + $0x2f0] sm:$0xff] }
  0xbf   :  { %626 = vmatpush.msra.mxu2 %v271_v44  ;;  %646 = vmatpush.msra.mxu3 %v399_v45  ;;  %v409_v43 = vld [vmem:[#allocation7 + $0x6f0] sm:$0xff]  ;;  %v282_v44 = vld [vmem:[#allocation7 + $0x2f8] sm:$0xff] }
  0xc0   :  { %666 = vmatpush.msrb.mxu0 %v272_v46  ;;  %686 = vmatpush.msrb.mxu1 %v400_v47  ;;  %v410_v45 = vld [vmem:[#allocation7 + $0x6f8] sm:$0xff]  ;;  %v273_v46 = vld [vmem:[#allocation7 + $0x2b0] sm:$0xff] }
  0xc1   :  { %627 = vmatpush.msra.mxu2 %v263_v48  ;;  %647 = vmatpush.msra.mxu3 %v391_v49  ;;  %v401_v47 = vld [vmem:[#allocation7 + $0x6b0] sm:$0xff]  ;;  %v274_v48 = vld [vmem:[#allocation7 + $0x2b8] sm:$0xff] }
  0xc2   :  { %667 = vmatpush.msrb.mxu0 %v264_v50  ;;  %687 = vmatpush.msrb.mxu1 %v392_v51  ;;  %v402_v49 = vld [vmem:[#allocation7 + $0x6b8] sm:$0xff]  ;;  %v265_v50 = vld [vmem:[#allocation7 + $0x270] sm:$0xff] }
  0xc3   :  { %628 = vmatpush.msra.mxu2 %v255_v52  ;;  %648 = vmatpush.msra.mxu3 %v383_v53  ;;  %v393_v51 = vld [vmem:[#allocation7 + $0x670] sm:$0xff]  ;;  %v266_v52 = vld [vmem:[#allocation7 + $0x278] sm:$0xff] }
  0xc4   :  { %668 = vmatpush.msrb.mxu0 %v256_v54  ;;  %688 = vmatpush.msrb.mxu1 %v384_v55  ;;  %v394_v53 = vld [vmem:[#allocation7 + $0x678] sm:$0xff]  ;;  %v257_v54 = vld [vmem:[#allocation7 + $0x230] sm:$0xff] }
  0xc5   :  { %629 = vmatpush.msra.mxu2 %v247_v56  ;;  %649 = vmatpush.msra.mxu3 %v375_v57  ;;  %v385_v55 = vld [vmem:[#allocation7 + $0x630] sm:$0xff]  ;;  %v258_v56 = vld [vmem:[#allocation7 + $0x238] sm:$0xff] }
  0xc6   :  { %669 = vmatpush.msrb.mxu0 %v248_v58  ;;  %689 = vmatpush.msrb.mxu1 %v376_v59  ;;  %v386_v57 = vld [vmem:[#allocation7 + $0x638] sm:$0xff]  ;;  %v249_v58 = vld [vmem:[#allocation7 + $0x1f0] sm:$0xff] }
  0xc7   :  { %630 = vmatpush.msra.mxu2 %v239_v60  ;;  %650 = vmatpush.msra.mxu3 %v367_v61  ;;  %v377_v59 = vld [vmem:[#allocation7 + $0x5f0] sm:$0xff]  ;;  %v250_v60 = vld [vmem:[#allocation7 + $0x1f8] sm:$0xff] }
  0xc8   :  { %670 = vmatpush.msrb.mxu0 %v240_v62  ;;  %690 = vmatpush.msrb.mxu1 %v368_v63  ;;  %v378_v61 = vld [vmem:[#allocation7 + $0x5f8] sm:$0xff]  ;;  %v241_v62 = vld [vmem:[#allocation7 + $0x1b0] sm:$0xff] }
  0xc9   :  { %631 = vmatpush.msra.mxu2 %v231_v0  ;;  %651 = vmatpush.msra.mxu3 %v359_v1  ;;  %v369_v63 = vld [vmem:[#allocation7 + $0x5b0] sm:$0xff]  ;;  %v242_v0 = vld [vmem:[#allocation7 + $0x1b8] sm:$0xff] }
  0xca   :  { %671 = vmatpush.msrb.mxu0 %v232_v2  ;;  %691 = vmatpush.msrb.mxu1 %v360_v3  ;;  %v370_v1 = vld [vmem:[#allocation7 + $0x5b8] sm:$0xff]  ;;  %v233_v2 = vld [vmem:[#allocation7 + $0x170] sm:$0xff] }
  0xcb   :  { %632 = vmatpush.msra.mxu2 %v223_v4  ;;  %652 = vmatpush.msra.mxu3 %v351_v5  ;;  %v361_v3 = vld [vmem:[#allocation7 + $0x570] sm:$0xff]  ;;  %v234_v4 = vld [vmem:[#allocation7 + $0x178] sm:$0xff] }
  0xcc   :  { %672 = vmatpush.msrb.mxu0 %v224_v6  ;;  %692 = vmatpush.msrb.mxu1 %v352_v7  ;;  %v362_v5 = vld [vmem:[#allocation7 + $0x578] sm:$0xff]  ;;  %v225_v6 = vld [vmem:[#allocation7 + $0x130] sm:$0xff] }
  0xcd   :  { %633 = vmatpush.msra.mxu2 %v215_v8  ;;  %653 = vmatpush.msra.mxu3 %v343_v9  ;;  %v353_v7 = vld [vmem:[#allocation7 + $0x530] sm:$0xff]  ;;  %v226_v8 = vld [vmem:[#allocation7 + $0x138] sm:$0xff] }
  0xce   :  { %673 = vmatpush.msrb.mxu0 %v216_v10  ;;  %693 = vmatpush.msrb.mxu1 %v344_v11  ;;  %v354_v9 = vld [vmem:[#allocation7 + $0x538] sm:$0xff]  ;;  %v217_v10 = vld [vmem:[#allocation7 + $0xf0] sm:$0xff] }
  0xcf   :  { %634 = vmatpush.msra.mxu2 %v207_v12  ;;  %654 = vmatpush.msra.mxu3 %v335_v13  ;;  %v345_v11 = vld [vmem:[#allocation7 + $0x4f0] sm:$0xff]  ;;  %v218_v12 = vld [vmem:[#allocation7 + $0xf8] sm:$0xff] }
  0xd0   :  { %674 = vmatpush.msrb.mxu0 %v208_v14  ;;  %694 = vmatpush.msrb.mxu1 %v336_v15  ;;  %v346_v13 = vld [vmem:[#allocation7 + $0x4f8] sm:$0xff]  ;;  %v209_v14 = vld [vmem:[#allocation7 + $0xb0] sm:$0xff] }
  0xd1   :  { %635 = vmatpush.msra.mxu2 %v199_v16  ;;  %655 = vmatpush.msra.mxu3 %v327_v17  ;;  %v337_v15 = vld [vmem:[#allocation7 + $0x4b0] sm:$0xff]  ;;  %v210_v16 = vld [vmem:[#allocation7 + $0xb8] sm:$0xff] }
  0xd2   :  { %675 = vmatpush.msrb.mxu0 %v200_v18  ;;  %695 = vmatpush.msrb.mxu1 %v328_v19  ;;  %v338_v17 = vld [vmem:[#allocation7 + $0x4b8] sm:$0xff]  ;;  %v201_v18 = vld [vmem:[#allocation7 + $0x70] sm:$0xff] }
  0xd3   :  { %636 = vmatpush.msra.mxu2 %v191_v20  ;;  %656 = vmatpush.msra.mxu3 %v319_v21  ;;  %v329_v19 = vld [vmem:[#allocation7 + $0x470] sm:$0xff]  ;;  %v202_v20 = vld [vmem:[#allocation7 + $0x78] sm:$0xff] }
  0xd4   :  { %676 = vmatpush.msrb.mxu0 %v192_v24  ;;  %696 = vmatpush.msrb.mxu1 %v320_v25  ;;  %v330_v21 = vld [vmem:[#allocation7 + $0x478] sm:$0xff]  ;;  %v193_v24 = vld [vmem:[#allocation7 + $0x30] sm:$0xff] }
  0xd5   :  { %637 = vmatmul.f32.vlgmr.msra.gmra.mxu2 %v1486_v22  ;;  %657 = vmatmul.f32.vlgmr.msra.gmra.mxu3 %v1488_v23  ;;  %v321_v25 = vld [vmem:[#allocation7 + $0x430] sm:$0xff] }
  0xd6   :  { %677 = vmatmul.f32.vlgmr.msrb.gmra.mxu0 %v1486_v22  ;;  %697 = vmatmul.f32.vlgmr.msrb.gmra.mxu1 %v1488_v23 }
  0xd7   :  { %701 = vmatpush.msrb.mxu2 %v313_v26  ;;  %721 = vmatpush.msrb.mxu3 %v441_v27  ;;  %v194_v26 = vld [vmem:[#allocation7 + $0x38] sm:$0xff] }
  0xd8   :  { %741 = vmatpush.msra.mxu0 %v314_v28  ;;  %761 = vmatpush.msra.mxu1 %v442_v29  ;;  %v322_v27 = vld [vmem:[#allocation7 + $0x438] sm:$0xff] }
  0xd9   :  { %702 = vmatpush.msrb.mxu2 %v305_v30  ;;  %722 = vmatpush.msrb.mxu3 %v433_v31  ;;  %v443_v31 = vld [vmem:[#allocation9] sm:$0xff] }
  0xda   :  { %742 = vmatpush.msra.mxu0 %v306_v32  ;;  %762 = vmatpush.msra.mxu1 %v434_v33  ;;  %v445_v33 = vperm.slane %v443_v31, 0 }
  0xdb   :  { %703 = vmatpush.msrb.mxu2 %v297_v34  ;;  %723 = vmatpush.msrb.mxu3 %v425_v35  ;;  %v446_v35 = vperm.slane %v443_v31, 1 }
  0xdc   :  { %743 = vmatpush.msra.mxu0 %v298_v36  ;;  %763 = vmatpush.msra.mxu1 %v426_v37  ;;  %v447_v36 = vperm.slane %v443_v31, 2 }
  0xdd   :  { %704 = vmatpush.msrb.mxu2 %v289_v38  ;;  %724 = vmatpush.msrb.mxu3 %v417_v39 }
  0xde   :  { %744 = vmatpush.msra.mxu0 %v290_v40  ;;  %764 = vmatpush.msra.mxu1 %v418_v41 }
  0xdf   :  { %705 = vmatpush.msrb.mxu2 %v281_v42  ;;  %725 = vmatpush.msrb.mxu3 %v409_v43  ;;  %v448_v43 = vperm.slane %v443_v31, 3 }
  0xe0   :  { %745 = vmatpush.msra.mxu0 %v282_v44  ;;  %765 = vmatpush.msra.mxu1 %v410_v45 }
  0xe1   :  { %706 = vmatpush.msrb.mxu2 %v273_v46  ;;  %726 = vmatpush.msrb.mxu3 %v401_v47 }
  0xe2   :  { %746 = vmatpush.msra.mxu0 %v274_v48  ;;  %766 = vmatpush.msra.mxu1 %v402_v49 }
  0xe3   :  { %707 = vmatpush.msrb.mxu2 %v265_v50  ;;  %727 = vmatpush.msrb.mxu3 %v393_v51 }
  0xe4   :  { %747 = vmatpush.msra.mxu0 %v266_v52  ;;  %767 = vmatpush.msra.mxu1 %v394_v53  ;;  %v450_v52 = vperm.slane %v443_v31, 5 }
  0xe5   :  { %708 = vmatpush.msrb.mxu2 %v257_v54  ;;  %728 = vmatpush.msrb.mxu3 %v385_v55 }
  0xe6   :  { %748 = vmatpush.msra.mxu0 %v258_v56  ;;  %768 = vmatpush.msra.mxu1 %v386_v57 }
  0xe7   :  { %709 = vmatpush.msrb.mxu2 %v249_v58  ;;  %729 = vmatpush.msrb.mxu3 %v377_v59  ;;  %v452_v59 = vperm.slane %v443_v31, 7 }
  0xe8   :  { %749 = vmatpush.msra.mxu0 %v250_v60  ;;  %769 = vmatpush.msra.mxu1 %v378_v61  ;;  %v451_v60 = vperm.slane %v443_v31, 6 }
  0xe9   :  { %710 = vmatpush.msrb.mxu2 %v241_v62  ;;  %730 = vmatpush.msrb.mxu3 %v369_v63 }
  0xea   :  { %750 = vmatpush.msra.mxu0 %v242_v0  ;;  %770 = vmatpush.msra.mxu1 %v370_v1 }
  0xeb   :  { %711 = vmatpush.msrb.mxu2 %v233_v2  ;;  %731 = vmatpush.msrb.mxu3 %v361_v3 }
  0xec   :  { %751 = vmatpush.msra.mxu0 %v234_v4  ;;  %771 = vmatpush.msra.mxu1 %v362_v5 }
  0xed   :  { %712 = vmatpush.msrb.mxu2 %v225_v6  ;;  %732 = vmatpush.msrb.mxu3 %v353_v7  ;;  %v1526_v7 = vld [vmem:[#allocation10 + $0x78] sm:$0xff] }
  0xee   :  { %752 = vmatpush.msra.mxu0 %v226_v8  ;;  %772 = vmatpush.msra.mxu1 %v354_v9 }
  0xef   :  { %713 = vmatpush.msrb.mxu2 %v217_v10  ;;  %733 = vmatpush.msrb.mxu3 %v345_v11  ;;  %v1535_v10 = vld [vmem:[#allocation10 + $0x70] sm:$0xff] }
  0xf0   :  { %753 = vmatpush.msra.mxu0 %v218_v12  ;;  %773 = vmatpush.msra.mxu1 %v346_v13  ;;  %v1542_v12 = vld [vmem:[#allocation10 + $0x68] sm:$0xff] }
  0xf1   :  { %714 = vmatpush.msrb.mxu2 %v209_v14  ;;  %734 = vmatpush.msrb.mxu3 %v337_v15  ;;  %v1549_v15 = vld [vmem:[#allocation10 + $0x60] sm:$0xff] }
  0xf2   :  { %754 = vmatpush.msra.mxu0 %v210_v16  ;;  %774 = vmatpush.msra.mxu1 %v338_v17  ;;  %v1555_v17 = vld [vmem:[#allocation10 + $0x58] sm:$0xff] }
  0xf3   :  { %715 = vmatpush.msrb.mxu2 %v201_v18  ;;  %735 = vmatpush.msrb.mxu3 %v329_v19  ;;  %v1561_v19 = vld [vmem:[#allocation10 + $0x50] sm:$0xff] }
  0xf4   :  { %755 = vmatpush.msra.mxu0 %v202_v20  ;;  %775 = vmatpush.msra.mxu1 %v330_v21  ;;  %v1567_v21 = vld [vmem:[#allocation10 + $0x48] sm:$0xff] }
  0xf5   :  { %716 = vmatpush.msrb.mxu2 %v193_v24  ;;  %736 = vmatpush.msrb.mxu3 %v321_v25  ;;  %v1573_v25 = vld [vmem:[#allocation10 + $0x40] sm:$0xff] }
  0xf6   :  { %756 = vmatpush.msra.mxu0 %v194_v26  ;;  %776 = vmatpush.msra.mxu1 %v322_v27  ;;  %v1579_v27 = vld [vmem:[#allocation10 + $0x38] sm:$0xff] }
  0xf7   :  { %717 = vmatmul.f32.vlgmr.msrb.gmra.mxu2 %v1486_v22  ;;  %737 = vmatmul.f32.vlgmr.msrb.gmra.mxu3 %v1488_v23 }
  0xf8   :  { %757 = vmatmul.f32.vlgmr.msra.gmra.mxu0 %v1486_v22  ;;  %777 = vmatmul.f32.vlgmr.msra.gmra.mxu1 %v1488_v23  ;;  %v449_v22 = vperm.slane %v443_v31, 4 }
  0xf9   :  { %875 = vmatpush.msra.mxu2 %v1526_v7  ;;  %921 = vmatpush.msra.mxu3 %v1526_v7 }
  0xfa   :  { %967 = vmatpush.msrb.mxu0 %v1526_v7  ;;  %1013 = vmatpush.msrb.mxu1 %v1526_v7 }
  0xfb   :  { %876 = vmatpush.msra.mxu2 %v1535_v10  ;;  %922 = vmatpush.msra.mxu3 %v1535_v10 }
  0xfc   :  { %968 = vmatpush.msrb.mxu0 %v1535_v10  ;;  %1014 = vmatpush.msrb.mxu1 %v1535_v10 }
  0xfd   :  { %877 = vmatpush.msra.mxu2 %v1542_v12  ;;  %923 = vmatpush.msra.mxu3 %v1542_v12 }
  0xfe   :  { %969 = vmatpush.msrb.mxu0 %v1542_v12  ;;  %1015 = vmatpush.msrb.mxu1 %v1542_v12 }
  0xff   :  { %878 = vmatpush.msra.mxu2 %v1549_v15  ;;  %924 = vmatpush.msra.mxu3 %v1549_v15 }
 0x100   :  { %970 = vmatpush.msrb.mxu0 %v1549_v15  ;;  %1016 = vmatpush.msrb.mxu1 %v1549_v15 }
 0x101   :  { %879 = vmatpush.msra.mxu2 %v1555_v17  ;;  %925 = vmatpush.msra.mxu3 %v1555_v17 }
 0x102   :  { %971 = vmatpush.msrb.mxu0 %v1555_v17  ;;  %1017 = vmatpush.msrb.mxu1 %v1555_v17 }
 0x103   :  { %880 = vmatpush.msra.mxu2 %v1561_v19  ;;  %926 = vmatpush.msra.mxu3 %v1561_v19 }
 0x104   :  { %972 = vmatpush.msrb.mxu0 %v1561_v19  ;;  %1018 = vmatpush.msrb.mxu1 %v1561_v19 }
 0x105   :  { %881 = vmatpush.msra.mxu2 %v1567_v21  ;;  %927 = vmatpush.msra.mxu3 %v1567_v21 }
 0x106   :  { %973 = vmatpush.msrb.mxu0 %v1567_v21  ;;  %1019 = vmatpush.msrb.mxu1 %v1567_v21 }
 0x107   :  { %882 = vmatpush.msra.mxu2 %v1573_v25  ;;  %928 = vmatpush.msra.mxu3 %v1573_v25 }
 0x108   :  { %974 = vmatpush.msrb.mxu0 %v1573_v25  ;;  %1020 = vmatpush.msrb.mxu1 %v1573_v25 }
 0x109   :  { %883 = vmatpush.msra.mxu2 %v1579_v27  ;;  %929 = vmatpush.msra.mxu3 %v1579_v27 }
 0x10a   :  { %975 = vmatpush.msrb.mxu0 %v1579_v27  ;;  %1021 = vmatpush.msrb.mxu1 %v1579_v27 }
 0x12e   :  { %v518_v29 = vpop.f32.mrf.mxu0 }
 0x12f   :  { %v538_v32 = vpop.f32.mrf.mxu1  ;;  %v519_v39 = vadd.f32 %v518_v29, %v446_v35  ;;  %v1587_v29 = vld [vmem:[#allocation10 + $0x30] sm:$0xff] }
 0x130   :  { %884 = vmatpush.msra.mxu2 %v1587_v29  ;;  %930 = vmatpush.msra.mxu3 %v1587_v29 }
 0x131   :  { %v1508_v45 = vadd.f32 %v538_v32, %v519_v39  ;;  %976 = vmatpush.msrb.mxu0 %v1587_v29  ;;  %1022 = vmatpush.msrb.mxu1 %v1587_v29 }
 0x134   :  { %v478_v28 = vpop.f32.mrf.mxu2 }
 0x135   :  { %v498_v30 = vpop.f32.mrf.mxu3  ;;  %v479_v38 = vadd.f32 %v478_v28, %v445_v33  ;;  %v1598_v33 = vld [vmem:[#allocation10 + $0x28] sm:$0xff] }
 0x136   :  { %885 = vmatpush.msra.mxu2 %v1598_v33  ;;  %931 = vmatpush.msra.mxu3 %v1598_v33 }
 0x137   :  { %v1506_v42 = vadd.f32 %v498_v30, %v479_v38  ;;  %977 = vmatpush.msrb.mxu0 %v1598_v33  ;;  %1023 = vmatpush.msrb.mxu1 %v1598_v33 }
 0x139   :  { %v598_v37 = vpop.f32.mrf.mxu0  ;;  %v618_v44 = vpop.f32.mrf.mxu1  ;;  %v781_v48 = vadd.f32 %v1508_v45, %v1506_v42 }
 0x13a   :  { %v599_v49 = vadd.f32 %v598_v37, %v448_v43  ;;  %v1604_v37 = vld [vmem:[#allocation10 + $0x20] sm:$0xff] }
 0x13b   :  { %886 = vmatpush.msra.mxu2 %v1604_v37  ;;  %932 = vmatpush.msra.mxu3 %v1604_v37 }
 0x13c   :  { %v1515_v54 = vadd.f32 %v618_v44, %v599_v49  ;;  %978 = vmatpush.msrb.mxu0 %v1604_v37  ;;  %1024 = vmatpush.msrb.mxu1 %v1604_v37 }
 0x13e   :  { %v558_v34 = vpop.f32.mrf.mxu2  ;;  %v578_v41 = vpop.f32.mrf.mxu3 }
 0x13f   :  { %v559_v40 = vadd.f32 %v558_v34, %v447_v36 }
 0x141   :  { %v1510_v46 = vadd.f32 %v578_v41, %v559_v40  ;;  %v1611_v41 = vld [vmem:[#allocation10 + $0x18] sm:$0xff] }
 0x142   :  { %887 = vmatpush.msra.mxu2 %v1611_v41  ;;  %933 = vmatpush.msra.mxu3 %v1611_v41 }
 0x143   :  { %v782_v51 = vadd.f32 %v781_v48, %v1510_v46  ;;  %979 = vmatpush.msrb.mxu0 %v1611_v41  ;;  %1025 = vmatpush.msrb.mxu1 %v1611_v41 }
 0x145   :  { %v783_v58 = vadd.f32 %v782_v51, %v1515_v54 }
 0x153   :  { %v678_v47 = vpop.f32.mrf.mxu0  ;;  %v698_v56 = vpop.f32.mrf.mxu1 }
 0x154   :  { %v679_v57 = vadd.f32 %v678_v47, %v450_v52 }
 0x156   :  { %v1521_v0 = vadd.f32 %v698_v56, %v679_v57  ;;  %v1635_v56 = vld [vmem:[#allocation10] sm:$0xff] }
 0x158   :  { %v638_v23 = vpop.f32.mrf.mxu2  ;;  %v658_v53 = vpop.f32.mrf.mxu3 }
 0x159   :  { %v639_v50 = vadd.f32 %v638_v23, %v449_v22  ;;  %v1619_v23 = vld [vmem:[#allocation10 + $0x10] sm:$0xff] }
 0x15a   :  { %888 = vmatpush.msra.mxu2 %v1619_v23  ;;  %934 = vmatpush.msra.mxu3 %v1619_v23 }
 0x15b   :  { %v1517_v55 = vadd.f32 %v658_v53, %v639_v50  ;;  %v1627_v50 = vld [vmem:[#allocation10 + $0x8] sm:$0xff]  ;;  %980 = vmatpush.msrb.mxu0 %v1619_v23  ;;  %1026 = vmatpush.msrb.mxu1 %v1619_v23 }
 0x15c   :  { %889 = vmatpush.msra.mxu2 %v1627_v50  ;;  %935 = vmatpush.msra.mxu3 %v1627_v50 }
 0x15d   :  { %v784_v62 = vadd.f32 %v783_v58, %v1517_v55  ;;  %981 = vmatpush.msrb.mxu0 %v1627_v50  ;;  %1027 = vmatpush.msrb.mxu1 %v1627_v50 }
 0x15e   :  { %890 = vmatpush.msra.mxu2 %v1635_v56  ;;  %936 = vmatpush.msra.mxu3 %v1635_v56 }
 0x15f   :  { %v785_v5 = vadd.f32 %v784_v62, %v1521_v0  ;;  %982 = vmatpush.msrb.mxu0 %v1635_v56  ;;  %1028 = vmatpush.msrb.mxu1 %v1635_v56 }
 0x160   :  { %1059 = vmatpush.msrb.mxu2 %v1526_v7  ;;  %1105 = vmatpush.msrb.mxu3 %v1526_v7 }
 0x161   :  { %1151 = vmatpush.msra.mxu0 %v1526_v7  ;;  %1197 = vmatpush.msra.mxu1 %v1526_v7 }
 0x162   :  { %1060 = vmatpush.msrb.mxu2 %v1535_v10  ;;  %1106 = vmatpush.msrb.mxu3 %v1535_v10 }
 0x163   :  { %1152 = vmatpush.msra.mxu0 %v1535_v10  ;;  %1198 = vmatpush.msra.mxu1 %v1535_v10 }
 0x164   :  { %1061 = vmatpush.msrb.mxu2 %v1542_v12  ;;  %1107 = vmatpush.msrb.mxu3 %v1542_v12 }
 0x165   :  { %1153 = vmatpush.msra.mxu0 %v1542_v12  ;;  %1199 = vmatpush.msra.mxu1 %v1542_v12 }
 0x166   :  { %1062 = vmatpush.msrb.mxu2 %v1549_v15  ;;  %1108 = vmatpush.msrb.mxu3 %v1549_v15 }
 0x167   :  { %1154 = vmatpush.msra.mxu0 %v1549_v15  ;;  %1200 = vmatpush.msra.mxu1 %v1549_v15  ;;  %v828_v15 = vld [vmem:[%s1778_s5] sm:$0x1] }
 0x168   :  { %1063 = vmatpush.msrb.mxu2 %v1555_v17  ;;  %1109 = vmatpush.msrb.mxu3 %v1555_v17 }
 0x169   :  { %1155 = vmatpush.msra.mxu0 %v1555_v17  ;;  %1201 = vmatpush.msra.mxu1 %v1555_v17 }
 0x16a   :  { %1064 = vmatpush.msrb.mxu2 %v1561_v19  ;;  %1110 = vmatpush.msrb.mxu3 %v1561_v19 }
 0x16b   :  { %1156 = vmatpush.msra.mxu0 %v1561_v19  ;;  %1202 = vmatpush.msra.mxu1 %v1561_v19  ;;  %v841_v19 = vld [vmem:[%s1779_s6] sm:$0x1] }
 0x16c   :  { %1065 = vmatpush.msrb.mxu2 %v1567_v21  ;;  %1111 = vmatpush.msrb.mxu3 %v1567_v21 }
 0x16d   :  { %1157 = vmatpush.msra.mxu0 %v1567_v21  ;;  %1203 = vmatpush.msra.mxu1 %v1567_v21 }
 0x16e   :  { %1066 = vmatpush.msrb.mxu2 %v1573_v25  ;;  %1112 = vmatpush.msrb.mxu3 %v1573_v25 }
 0x16f   :  { %1158 = vmatpush.msra.mxu0 %v1573_v25  ;;  %1204 = vmatpush.msra.mxu1 %v1573_v25 }
 0x170   :  { %1067 = vmatpush.msrb.mxu2 %v1579_v27  ;;  %1113 = vmatpush.msrb.mxu3 %v1579_v27 }
 0x171   :  { %1159 = vmatpush.msra.mxu0 %v1579_v27  ;;  %1205 = vmatpush.msra.mxu1 %v1579_v27 }
 0x172   :  { %1068 = vmatpush.msrb.mxu2 %v1587_v29  ;;  %1114 = vmatpush.msrb.mxu3 %v1587_v29 }
 0x173   :  { %1160 = vmatpush.msra.mxu0 %v1587_v29  ;;  %1206 = vmatpush.msra.mxu1 %v1587_v29 }
 0x174   :  { %1069 = vmatpush.msrb.mxu2 %v1598_v33  ;;  %1115 = vmatpush.msrb.mxu3 %v1598_v33 }
 0x175   :  { %v758_v61 = vpop.f32.mrf.mxu0  ;;  %v778_v6 = vpop.f32.mrf.mxu1  ;;  %1161 = vmatpush.msra.mxu0 %v1598_v33  ;;  %1207 = vmatpush.msra.mxu1 %v1598_v33 }
 0x176   :  { %v759_v1 = vadd.f32 %v758_v61, %v452_v59  ;;  %1070 = vmatpush.msrb.mxu2 %v1604_v37  ;;  %1116 = vmatpush.msrb.mxu3 %v1604_v37 }
 0x177   :  { %1162 = vmatpush.msra.mxu0 %v1604_v37  ;;  %1208 = vmatpush.msra.mxu1 %v1604_v37 }
 0x178   :  { %v1528_v8 = vadd.f32 %v778_v6, %v759_v1  ;;  %1071 = vmatpush.msrb.mxu2 %v1611_v41  ;;  %1117 = vmatpush.msrb.mxu3 %v1611_v41 }
 0x179   :  { %1163 = vmatpush.msra.mxu0 %v1611_v41  ;;  %1209 = vmatpush.msra.mxu1 %v1611_v41 }
 0x17a   :  { %v718_v63 = vpop.f32.mrf.mxu2  ;;  %v738_v3 = vpop.f32.mrf.mxu3  ;;  %1072 = vmatpush.msrb.mxu2 %v1619_v23  ;;  %1118 = vmatpush.msrb.mxu3 %v1619_v23 }
 0x17b   :  { %v719_v2 = vadd.f32 %v718_v63, %v451_v60  ;;  %1164 = vmatpush.msra.mxu0 %v1619_v23  ;;  %1210 = vmatpush.msra.mxu1 %v1619_v23 }
 0x17c   :  { %1073 = vmatpush.msrb.mxu2 %v1627_v50  ;;  %1119 = vmatpush.msrb.mxu3 %v1627_v50 }
 0x17d   :  { %v1523_v4 = vadd.f32 %v738_v3, %v719_v2  ;;  %1165 = vmatpush.msra.mxu0 %v1627_v50  ;;  %1211 = vmatpush.msra.mxu1 %v1627_v50 }
 0x17e   :  { %1074 = vmatpush.msrb.mxu2 %v1635_v56  ;;  %1120 = vmatpush.msrb.mxu3 %v1635_v56 }
 0x17f   :  { %v786_v9 = vadd.f32 %v785_v5, %v1523_v4  ;;  %1166 = vmatpush.msra.mxu0 %v1635_v56  ;;  %1212 = vmatpush.msra.mxu1 %v1635_v56 }
 0x181   :  { %v787_v11 = vadd.f32 %v786_v9, %v1528_v8 }
 0x183   :  { %v789_v13 = vsel %vm788_vm1, %v787_v11, 0.0 }
 0x184   :  { %v790_v14 = vrot.slane %v789_v13, 4 }
 0x186   :  { %v791_v16 = vadd.f32 %v790_v14, %v789_v13 }
 0x188   :  { %v792_v18 = vrot.slane %v791_v16, 2 }
 0x18a   :  { %v793_v20 = vadd.f32 %v792_v18, %v791_v16 }
 0x18c   :  { %v794_v24 = vrot.slane %v793_v20, 1 }
 0x18e   :  { %v795_v26 = vadd.f32 %v794_v24, %v793_v20 }
 0x190   :  { %v1583_v28 = vmul.f32 0.0625, %v795_v26 }
 0x192   :  { %v797_v30 = vsub.f32 %v1506_v42, %v1583_v28  ;;  %v799_v31 = vsub.f32 %v1508_v45, %v1583_v28  ;;  %v802_v32 = vsub.f32 %v1510_v46, %v1583_v28  ;;  %v805_v36 = vsub.f32 %v1515_v54, %v1583_v28 }
 0x193   :  { %v808_v40 = vsub.f32 %v1517_v55, %v1583_v28  ;;  %v811_v44 = vsub.f32 %v1521_v0, %v1583_v28  ;;  %v814_v49 = vsub.f32 %v1523_v4, %v1583_v28  ;;  %v817_v53 = vsub.f32 %v1528_v8, %v1583_v28 }
 0x194   :  { %v798_v34 = vmul.f32 %v797_v30, %v797_v30  ;;  %v800_v35 = vmul.f32 %v799_v31, %v799_v31  ;;  %v803_v39 = vmul.f32 %v802_v32, %v802_v32  ;;  %v806_v22 = vmul.f32 %v805_v36, %v805_v36 }
 0x195   :  { %v809_v48 = vmul.f32 %v808_v40, %v808_v40  ;;  %v812_v52 = vmul.f32 %v811_v44, %v811_v44  ;;  %v815_v58 = vmul.f32 %v814_v49, %v814_v49  ;;  %v818_v60 = vmul.f32 %v817_v53, %v817_v53 }
 0x196   :  { %v801_v38 = vadd.f32 %v800_v35, %v798_v34 }
 0x198   :  { %v804_v43 = vadd.f32 %v803_v39, %v801_v38 }
 0x19a   :  { %v807_v47 = vadd.f32 %v806_v22, %v804_v43 }
 0x19c   :  { %v810_v51 = vadd.f32 %v809_v48, %v807_v47 }
 0x19e   :  { %v813_v57 = vadd.f32 %v812_v52, %v810_v51  ;;  %v1240_v51 = vld [vmem:[%s1781_s8] ss:$0 sm:$0xff] }
 0x19f   :  { %v1241_v52 = vld [vmem:[%s1781_s8] ss:$0 sm:$0xff] }
 0x1a0   :  { %v816_v59 = vadd.f32 %v815_v58, %v813_v57 }
 0x1a2   :  { %v819_v61 = vadd.f32 %v818_v60, %v816_v59  ;;  %v1242_v59 = vld [vmem:[%s1781_s8] ss:$0 sm:$0xff] }
 0x1a3   :  { %v1243_v60 = vld [vmem:[%s1781_s8] ss:$0 sm:$0xff] }
 0x1a4   :  { %v820_v62 = vsel %vm788_vm1, %v819_v61, 0.0 }
 0x1a5   :  { %v821_v63 = vrot.slane %v820_v62, 4 }
 0x1a7   :  { %v822_v1 = vadd.f32 %v821_v63, %v820_v62  ;;  %v1244_v63 = vld [vmem:[%s1781_s8] ss:$0 sm:$0xff] }
 0x1a9   :  { %v823_v2 = vrot.slane %v822_v1, 2 }
 0x1ab   :  { %v824_v3 = vadd.f32 %v823_v2, %v822_v1  ;;  %v1245_v1 = vld [vmem:[%s1781_s8] ss:$0 sm:$0xff] }
 0x1ad   :  { %v825_v5 = vrot.slane %v824_v3, 1 }
 0x1af   :  { %v826_v6 = vadd.f32 %v825_v5, %v824_v3 }
 0x1b1   :  { %v827_v7 = vmul.f32 0.0625, %v826_v6 }
 0x1b3   :  { %v829_v9 = vadd.f32 1e-05, %v827_v7 }
 0x1b5   :  { %1252 = vrsqrt.f32 %v829_v9  ;;  %vm836_vm3 = vweird.f32 %v829_v9 }
 0x1bb   :  { %v1253_v10 = vpop.eup %1252 }
 0x1bc   :  { %v831_v11 = vmul.f32 %v1253_v10, %v829_v9  ;;  %vm837_vm2 = vweird.f32 %v1253_v10 }
 0x1bd   :  { %vm838_vm4 = vmor %vm836_vm3, %vm837_vm2 }
 0x1be   :  { %v832_v12 = vmul.f32 %v1253_v10, %v831_v11  ;;  %v1247_v11 = vld [vmem:[%s1781_s8] ss:$0 sm:$0xff] }
 0x1c0   :  { %v833_v13 = vmul.f32 0.5, %v832_v12 }
 0x1c2   :  { %v834_v14 = vsub.f32 1.5, %v833_v13 }
 0x1c4   :  { %v835_v16 = vmul.f32 %v1253_v10, %v834_v14 }
 0x1c6   :  { %v839_v17 = vsel %vm838_vm4, %v1253_v10, %v835_v16  ;;  %v1246_v10 = vld [vmem:[%s1781_s8] ss:$0 sm:$0xff] }
 0x1c7   :  { %v840_v18 = vmul.f32 %v839_v17, %v828_v15 }
 0x1c9   :  { %v842_v20 = vmul.f32 %v840_v18, %v1583_v28  ;;  %v845_v21 = vperm.slane %v840_v18, 0 }
 0x1cb   :  { %v843_v24 = vsub.f32 %v841_v19, %v842_v20  ;;  %v847_v26 = vmul.f32 %v845_v21, %v1506_v42  ;;  %v896_v27 = vmul.f32 %v845_v21, %v1508_v45  ;;  %v942_v29 = vmul.f32 %v845_v21, %v1510_v46 }
 0x1cc   :  { %v1126_v30 = vmul.f32 %v845_v21, %v1523_v4  ;;  %v988_v31 = vmul.f32 %v845_v21, %v1515_v54  ;;  %v1034_v35 = vmul.f32 %v845_v21, %v1517_v55  ;;  %v1080_v37 = vmul.f32 %v845_v21, %v1521_v0 }
 0x1cd   :  { %v849_v25 = vperm.slane %v843_v24, 0  ;;  %v1172_v38 = vmul.f32 %v845_v21, %v1528_v8 }
 0x1cf   :  { %v851_v32 = vadd.f32 %v849_v25, %v847_v26  ;;  %v897_v33 = vadd.f32 %v896_v27, %v849_v25  ;;  %v943_v34 = vadd.f32 %v942_v29, %v849_v25  ;;  %v1127_v36 = vadd.f32 %v1126_v30, %v849_v25 }
 0x1d0   :  { %v989_v28 = vadd.f32 %v988_v31, %v849_v25  ;;  %v1035_v40 = vadd.f32 %v1034_v35, %v849_v25  ;;  %v1081_v41 = vadd.f32 %v1080_v37, %v849_v25  ;;  %v1173_v22 = vadd.f32 %v1172_v38, %v849_v25 }
 0x1d1   :  { %vm852_vm5 = vcmp.ge.f32.partialorder %v851_v32, 0.0  ;;  %v853_v42 = vmul.f32 0.2, %v851_v32  ;;  %vm898_vm6 = vcmp.ge.f32.partialorder %v897_v33, 0.0  ;;  %v899_v45 = vmul.f32 0.2, %v897_v33 }
 0x1d2   :  { %vm944_vm7 = vcmp.ge.f32.partialorder %v943_v34, 0.0  ;;  %v945_v46 = vmul.f32 0.2, %v943_v34  ;;  %vm990_vm8 = vcmp.ge.f32.partialorder %v989_v28, 0.0  ;;  %v991_v4 = vmul.f32 0.2, %v989_v28 }
 0x1d3   :  { %v854_v54 = vsel %vm852_vm5, %v851_v32, %v853_v42  ;;  %v900_v39 = vsel %vm898_vm6, %v897_v33, %v899_v45  ;;  %v1037_v0 = vmul.f32 0.2, %v1035_v40  ;;  %v1083_v8 = vmul.f32 0.2, %v1081_v41 }
 0x1d4   :  { %891 = vmatmul.f32.vlgmr.msra.gmra.mxu2 %v854_v54  ;;  %937 = vmatmul.f32.vlgmr.msra.gmra.mxu3 %v900_v39  ;;  %v946_v55 = vsel %vm944_vm7, %v943_v34, %v945_v46  ;;  %v992_v43 = vsel %vm990_vm8, %v989_v28, %v991_v4  ;;  %vm1036_vm9 = vcmp.ge.f32.partialorder %v1035_v40, 0.0  ;;  %vm1082_vm10 = vcmp.ge.f32.partialorder %v1081_v41, 0.0 }
 0x1d5   :  { %983 = vmatmul.f32.vlgmr.msrb.gmra.mxu0 %v946_v55  ;;  %1029 = vmatmul.f32.vlgmr.msrb.gmra.mxu1 %v992_v43  ;;  %v1129_v44 = vmul.f32 0.2, %v1127_v36  ;;  %v1175_v23 = vmul.f32 0.2, %v1173_v22  ;;  %vm1128_vm11 = vcmp.ge.f32.partialorder %v1127_v36, 0.0  ;;  %vm1174_vm12 = vcmp.ge.f32.partialorder %v1173_v22, 0.0 }
 0x1d6   :  { %v1038_v47 = vsel %vm1036_vm9, %v1035_v40, %v1037_v0  ;;  %v1084_v48 = vsel %vm1082_vm10, %v1081_v41, %v1083_v8 }
 0x1d7   :  { %v1130_v49 = vsel %vm1128_vm11, %v1127_v36, %v1129_v44  ;;  %v1176_v50 = vsel %vm1174_vm12, %v1173_v22, %v1175_v23 }
 0x1dc   :  { %1075 = vmatmul.f32.vlgmr.msrb.gmra.mxu2 %v1038_v47  ;;  %1121 = vmatmul.f32.vlgmr.msrb.gmra.mxu3 %v1084_v48 }
 0x1dd   :  { %1167 = vmatmul.f32.vlgmr.msra.gmra.mxu0 %v1130_v49  ;;  %1213 = vmatmul.f32.vlgmr.msra.gmra.mxu1 %v1176_v50 }
 0x252   :  { %v984_v53 = vpop.f32.mrf.mxu0  ;;  %v1030_v56 = vpop.f32.mrf.mxu1 }
 0x253   :  { %v985_v57 = vadd.f32 %v1240_v51, %v984_v53  ;;  %v1031_v58 = vadd.f32 %v1241_v52, %v1030_v56 }
 0x255   :  { %987 = vst [vmem:[%s1782_s9 + $0x4] sm:$0x3] %v985_v57 }
 0x256   :  { %1033 = vst [vmem:[%s1782_s9 + $0x6] sm:$0x3] %v1031_v58 }
 0x257   :  { %v892_v61 = vpop.f32.mrf.mxu2  ;;  %v938_v62 = vpop.f32.mrf.mxu3 }
 0x258   :  { %v893_v2 = vadd.f32 %v1242_v59, %v892_v61  ;;  %v939_v3 = vadd.f32 %v1243_v60, %v938_v62 }
 0x25a   :  { %895 = vst [vmem:[%s1782_s9] sm:$0x3] %v893_v2  ;;  %v1168_v5 = vpop.f32.mrf.mxu0  ;;  %v1214_v6 = vpop.f32.mrf.mxu1 }
 0x25b   :  { %941 = vst [vmem:[%s1782_s9 + $0x2] sm:$0x3] %v939_v3  ;;  %v1169_v7 = vadd.f32 %v1244_v63, %v1168_v5  ;;  %v1215_v9 = vadd.f32 %v1245_v1, %v1214_v6 }
 0x25d   :  { %1171 = vst [vmem:[%s1782_s9 + $0xc] sm:$0x3] %v1169_v7 }
 0x25e   :  { %1217 = vst [vmem:[%s1782_s9 + $0xe] sm:$0x3] %v1215_v9 }
 0x25f   :  { %v1076_v12 = vpop.f32.mrf.mxu2  ;;  %v1122_v13 = vpop.f32.mrf.mxu3 }
 0x260   :  { %v1077_v14 = vadd.f32 %v1246_v10, %v1076_v12  ;;  %v1123_v15 = vadd.f32 %v1247_v11, %v1122_v13 }
 0x262   :  { %1079 = vst [vmem:[%s1782_s9 + $0x8] sm:$0x3] %v1077_v14 }
 0x263   :  { %1125 = vst [vmem:[%s1782_s9 + $0xa] sm:$0x3] %v1123_v15 }
 0x264   :  { %1222 = vsyncpa [#allocation3], 1 }
 0x265   :  { %1223 = vsyncpa [#allocation5], 1 }
 0x266   :  { %1224 = vsyncpa [#allocation8], 1 }
 0x267   :  { %1225 = vsyncpa [#allocation11], 1 }

</bundles_post_ra>
